<compile_context>
chip_gen: v5e
topology: v5e:2x2
jax: 0.10.0
libtpu: 0.0.40
codegen_flags: <defaults>
</compile_context>

<pallas_src>
import jax
import jax.numpy as jnp
from jax.experimental import pallas as pl
from jax.experimental.pallas import tpu as pltpu


def _round_up(x, m):
    return (x + m - 1) // m * m


def _pick_time_block(seq_len, max_blk=16):
    """Largest divisor of seq_len that is <= max_blk (caps in-kernel unroll/VMEM)."""
    if seq_len <= max_blk:
        return seq_len
    for tb in range(max_blk, 0, -1):
        if seq_len % tb == 0:
            return tb
    return seq_len  # unreachable (1 always divides)
    # TODO(synk): for awkward (prime) long seq_len this degenerates to tblk=1; a
    # masked final time-block would be better.


def _critic_gru_kernel(gi0_ref,      # (tblk, BT, 3H) bf16  hoisted layer-0 input projection
                       w_hh0_ref,    # (H, 3H) bf16         layer-0 hidden weights (transposed)
                       w_hh1_ref,    # (H, 3H) bf16         layer-1 hidden weights (transposed)
                       w_ih1_ref,    # (H, 3H) bf16         layer-1 input weights (transposed)
                       b_gh0_ref,    # (1, 3H) f32          [0, 0, b_hh0_n]
                       b_gh1_ref,    # (1, 3H) f32          [b_ih1_r+b_hh1_r, b_ih1_z+b_hh1_z, b_hh1_n]
                       b_gi1_ref,    # (1, 3H) f32          [0, 0, b_ih1_n]
                       h1_ref,       # (BT, H) f32          output: final layer-1 hidden
                       carry_ref):   # (BT, 2H) f32 scratch: [h0 | h1] carried across time blocks
    tblk, bt, three_h = gi0_ref.shape
    h_dim = three_h // 3
    two_h = 2 * h_dim
    f32 = jnp.float32
    bf16 = jnp.bfloat16

    # New batch tile -> reset the recurrent state.
    @pl.when(pl.program_id(1) == 0)
    def _():
        carry_ref[...] = jnp.zeros_like(carry_ref)

    # Load weights once; pre-broadcast bias rows ONCE (JAX does not CSE broadcasts).
    w_hh0 = w_hh0_ref[...]
    w_hh1 = w_hh1_ref[...]
    w_ih1 = w_ih1_ref[...]
    b_gh0 = jnp.broadcast_to(b_gh0_ref[...], (bt, three_h))
    b_gh1 = jnp.broadcast_to(b_gh1_ref[...], (bt, three_h))
    b_gi1 = jnp.broadcast_to(b_gi1_ref[...], (bt, three_h))

    carry = carry_ref[...]
    h0 = carry[:, :h_dim]
    h1 = carry[:, h_dim:]

    # Short unrolled recurrence over this time block (tblk <= 16, static).
    for i in range(tblk):
        gi0 = gi0_ref[i].astype(f32)                                    # (BT, 3H)

        # Both hidden->gates matmuls depend only on the previous carry, so they sit
        # off the serial h0_new -> gi1 chain.  bf16 operands, f32 accumulation.
        gh0 = jnp.dot(h0.astype(bf16), w_hh0, preferred_element_type=f32) + b_gh0
        gh1 = jnp.dot(h1.astype(bf16), w_hh1, preferred_element_type=f32) + b_gh1

        # ---- layer 0 (PyTorch gate order r, z, n) ----
        rz0 = jax.nn.sigmoid(gi0[:, :two_h] + gh0[:, :two_h])
        r0 = rz0[:, :h_dim]
        z0 = rz0[:, h_dim:]
        n0 = jnp.tanh(gi0[:, two_h:] + r0 * gh0[:, two_h:])
        h0 = (1.0 - z0) * n0 + z0 * h0

        # ---- layer 1 (the only matmul on the serial h0_new -> h1_new chain) ----
        gi1 = jnp.dot(h0.astype(bf16), w_ih1, preferred_element_type=f32) + b_gi1
        rz1 = jax.nn.sigmoid(gi1[:, :two_h] + gh1[:, :two_h])
        r1 = rz1[:, :h_dim]
        z1 = rz1[:, h_dim:]
        n1 = jnp.tanh(gi1[:, two_h:] + r1 * gh1[:, two_h:])
        h1 = (1.0 - z1) * n1 + z1 * h1

    # Persist the carry for the next time block (once per block, not per step).
    carry_ref[...] = jnp.concatenate([h0, h1], axis=1)
    # Output block index is constant across the time axis, so it stays resident in
    # VMEM; the final write wins and is flushed when the batch tile changes.
    h1_ref[...] = h1


def critic_forward(params, state):
    """state: (batch, seq) int32 -> q_values: (batch, vocab) f32."""
    batch, seq_len = state.shape
    hidden = params["w_hh_l0"].shape[1]
    h2, h3 = 2 * hidden, 3 * hidden
    f32 = jnp.float32
    bf16 = jnp.bfloat16

    # Batch tile: fill MXU rows (up to 128); pad batch to a whole tile.
    bt = min(128, _round_up(batch, 8))
    b_pad = _round_up(batch, bt)

    # Time block: caps in-kernel unroll and the streamed gi0 VMEM residency.
    tblk = _pick_time_block(seq_len, 16)
    n_tb = seq_len // tblk

    b_ih0 = params["b_ih_l0"].astype(f32)
    b_hh0 = params["b_hh_l0"].astype(f32)
    b_ih1 = params["b_ih_l1"].astype(f32)
    b_hh1 = params["b_hh_l1"].astype(f32)

    # --- glue: embedding gather directly in time-major order (no activation
    # transpose) and the hoisted layer-0 input projection (one big matmul, off the
    # serial chain).  Fold b_ih0 fully and the r/z parts of b_hh0 into its bias.
    emb_t = params["embeddings"].astype(f32)[state.T]                      # (S, B, E)
    gi0_bias = jnp.concatenate([b_ih0[:h2] + b_hh0[:h2], b_ih0[h2:]])
    gi0_all = jnp.dot(emb_t, params["w_ih_l0"].astype(f32).T) + gi0_bias   # (S, B, 3H)
    gi0_all = jnp.pad(gi0_all, ((0, 0), (0, b_pad - batch), (0, 0))).astype(bf16)

    # GRU weights (transposed so the kernel does h @ W^T) as bf16 MXU operands.
    w_hh0_t = params["w_hh_l0"].astype(bf16).T                             # (H, 3H)
    w_hh1_t = params["w_hh_l1"].astype(bf16).T                             # (H, 3H)
    w_ih1_t = params["w_ih_l1"].astype(bf16).T                             # (H, 3H)

    zeros2h = jnp.zeros((h2,), f32)
    b_gh0 = jnp.concatenate([zeros2h, b_hh0[h2:]])[None, :]                        # (1, 3H)
    b_gh1 = jnp.concatenate([b_ih1[:h2] + b_hh1[:h2], b_hh1[h2:]])[None, :]        # (1, 3H)
    b_gi1 = jnp.concatenate([zeros2h, b_ih1[h2:]])[None, :]                        # (1, 3H)

    # Explicit VMEM budget (double-buffered streamed block + weights + scratch),
    # with headroom, clamped to a value that is valid on v5e/v6e/v7x.
    gi0_blk_bytes = tblk * bt * h3 * 2
    weight_bytes = 3 * hidden * h3 * 2 + 3 * h3 * 4
    other_bytes = bt * h2 * 4 + bt * hidden * 4
    vmem_limit = int(min(max(4 * (gi0_blk_bytes + weight_bytes) + 2 * other_bytes,
                             16 << 20), 32 << 20))

    # NOTE: constant-index weight specs could be single-buffered (pl.Buffered(1)) to
    # save VMEM, but with the HxV output weight moved out of the kernel they are
    # small, so default double-buffering is kept for robustness.
    grid = (b_pad // bt, n_tb)
    h1_final = pl.pallas_call(
        _critic_gru_kernel,
        out_shape=jax.ShapeDtypeStruct((b_pad, hidden), f32),
        grid=grid,
        in_specs=[
            pl.BlockSpec((tblk, bt, h3), lambda b, t: (t, b, 0)),   # gi0 (batch+time tiled)
            pl.BlockSpec((hidden, h3), lambda b, t: (0, 0)),        # w_hh0
            pl.BlockSpec((hidden, h3), lambda b, t: (0, 0)),        # w_hh1
            pl.BlockSpec((hidden, h3), lambda b, t: (0, 0)),        # w_ih1
            pl.BlockSpec((1, h3), lambda b, t: (0, 0)),             # b_gh0
            pl.BlockSpec((1, h3), lambda b, t: (0, 0)),             # b_gh1
            pl.BlockSpec((1, h3), lambda b, t: (0, 0)),             # b_gi1
        ],
        out_specs=pl.BlockSpec((bt, hidden), lambda b, t: (b, 0)),
        scratch_shapes=[pltpu.VMEM((bt, h2), f32)],                 # [h0 | h1] carry
        compiler_params=pltpu.CompilerParams(
            dimension_semantics=("parallel", "arbitrary"),
            vmem_limit_bytes=vmem_limit),
    )(gi0_all, w_hh0_t, w_hh1_t, w_ih1_t, b_gh0, b_gh1, b_gi1)

    h1_final = h1_final[:batch]

    # Epilogue in plain XLA: dense (B,H)@(H,H) and (B,H)@(H,V) GEMMs tile well and
    # keep the largest weight (H x vocab) out of the Pallas kernel's VMEM budget.
    out = jnp.maximum(h1_final @ params["w_g2h"].astype(f32).T
                      + params["b_g2h"].astype(f32), 0.0)
    return out @ params["w_h2o"].astype(f32).T + params["b_h2o"].astype(f32)


def init_params(key, embedding_dim, hidden_dim, vocab_size):
    ks = jax.random.split(key, 13)
    bound = 1.0 / float(hidden_dim) ** 0.5

    def u(k, shape):
        return jax.random.uniform(k, shape, jnp.float32, -bound, bound)

    return {
        "embeddings": jax.random.normal(ks[0], (vocab_size, embedding_dim), jnp.float32),
        # GRU layer 0
        "w_ih_l0": u(ks[1], (3 * hidden_dim, embedding_dim)),
        "w_hh_l0": u(ks[2], (3 * hidden_dim, hidden_dim)),
        "b_ih_l0": u(ks[3], (3 * hidden_dim,)),
        "b_hh_l0": u(ks[4], (3 * hidden_dim,)),
        # GRU layer 1
        "w_ih_l1": u(ks[5], (3 * hidden_dim, hidden_dim)),
        "w_hh_l1": u(ks[6], (3 * hidden_dim, hidden_dim)),
        "b_ih_l1": u(ks[7], (3 * hidden_dim,)),
        "b_hh_l1": u(ks[8], (3 * hidden_dim,)),
        # gru2hidden
        "w_g2h": u(ks[9], (hidden_dim, hidden_dim)),
        "b_g2h": u(ks[10], (hidden_dim,)),
        # hidden2out
        "w_h2o": u(ks[11], (vocab_size, hidden_dim)),
        "b_h2o": u(ks[12], (vocab_size,)),
    }


def critic_ref(params, state):
    """Pure-JAX reference (mirrors PyTorch eval-mode forward)."""
    emb = params["embeddings"][state].astype(jnp.float32)      # (B, S, E)
    emb = jnp.transpose(emb, (1, 0, 2))                        # (S, B, E)
    B = state.shape[0]
    H = params["w_hh_l0"].shape[1]

    def cell(x, h, wi, wh, bi, bh):
        gi = x @ wi.T + bi
        gh = h @ wh.T + bh
        ir, iz, inn = jnp.split(gi, 3, axis=-1)
        hr, hz, hn = jnp.split(gh, 3, axis=-1)
        r = jax.nn.sigmoid(ir + hr)
        z = jax.nn.sigmoid(iz + hz)
        n = jnp.tanh(inn + r * hn)
        return (1.0 - z) * n + z * h

    h0 = jnp.zeros((B, H), jnp.float32)
    h1 = jnp.zeros((B, H), jnp.float32)
    for t in range(emb.shape[0]):
        h0 = cell(emb[t], h0, params["w_ih_l0"], params["w_hh_l0"],
                  params["b_ih_l0"], params["b_hh_l0"])
        h1 = cell(h0, h1, params["w_ih_l1"], params["w_hh_l1"],
                  params["b_ih_l1"], params["b_hh_l1"])
    out = jax.nn.relu(h1 @ params["w_g2h"].T + params["b_g2h"])
    return out @ params["w_h2o"].T + params["b_h2o"]


if __name__ == "__main__":
    embedding_dim, hidden_dim, vocab_size = 32, 32, 16
    batch, seq_len = 2, 8

    key = jax.random.PRNGKey(0)
    k_params, k_state = jax.random.split(key)
    params = init_params(k_params, embedding_dim, hidden_dim, vocab_size)
    state = jax.random.randint(k_state, (batch, seq_len), 0, vocab_size, dtype=jnp.int32)

    q_values = jax.jit(critic_forward)(params, state)
    q_values = jax.block_until_ready(q_values)

    q_ref = critic_ref(params, state)
    assert q_values.shape == (batch, vocab_size)
    # bf16 MXU operands in the recurrence -> tolerance looser than a pure-f32 kernel.
    assert jnp.allclose(q_values, q_ref, atol=2e-2, rtol=2e-2), (q_values, q_ref)
    print("KERNEL_OK")
</pallas_src>

<mosaic_0001>
module attributes {stable_mosaic.version = 11 : i64} {
  func.func @_critic_gru_kernel(%arg0: i32, %arg1: i32, %arg2: memref<8x8x96xbf16, #tpu.memory_space<vmem>>, %arg3: memref<32x96xbf16, #tpu.memory_space<vmem>>, %arg4: memref<32x96xbf16, #tpu.memory_space<vmem>>, %arg5: memref<32x96xbf16, #tpu.memory_space<vmem>>, %arg6: memref<1x96xf32, #tpu.memory_space<vmem>>, %arg7: memref<1x96xf32, #tpu.memory_space<vmem>>, %arg8: memref<1x96xf32, #tpu.memory_space<vmem>>, %arg9: memref<8x32xf32, #tpu.memory_space<vmem>>, %arg10: memref<8x64xf32, #tpu.memory_space<vmem>>) attributes {dimension_semantics = [#tpu.dimension_semantics<parallel>, #tpu.dimension_semantics<arbitrary>], iteration_bounds = array<i64: 1, 1>, scalar_prefetch = 0 : i64, scratch_operands = 1 : i64, tpu.core_type = #tpu.core_type<tc>, window_params = [{transform_indices = @transform_0, window_bounds = array<i64: 8, 8, 96>}, {pipeline_mode = #tpu.pipeline_mode<synchronous>, transform_indices = @transform_1, window_bounds = array<i64: 32, 96>}, {pipeline_mode = #tpu.pipeline_mode<synchronous>, transform_indices = @transform_2, window_bounds = array<i64: 32, 96>}, {pipeline_mode = #tpu.pipeline_mode<synchronous>, transform_indices = @transform_3, window_bounds = array<i64: 32, 96>}, {pipeline_mode = #tpu.pipeline_mode<synchronous>, transform_indices = @transform_4, window_bounds = array<i64: 1, 96>}, {pipeline_mode = #tpu.pipeline_mode<synchronous>, transform_indices = @transform_5, window_bounds = array<i64: 1, 96>}, {pipeline_mode = #tpu.pipeline_mode<synchronous>, transform_indices = @transform_6, window_bounds = array<i64: 1, 96>}, {transform_indices = @transform_7, window_bounds = array<i64: 8, 32>}]} {
    %c0_i32 = arith.constant 0 : i32
    %0 = arith.cmpi eq, %arg1, %c0_i32 : i32
    %1 = arith.extui %0 : i1 to i32
    %c0_i32_0 = arith.constant 0 : i32
    %2 = arith.cmpi ne, %1, %c0_i32_0 : i32
    scf.if %2 {
      %cst_90 = arith.constant 0.000000e+00 : f32
      %437 = vector.broadcast %cst_90 : f32 to vector<8x64xf32>
      %c0_91 = arith.constant 0 : index
      %c0_92 = arith.constant 0 : index
      %438 = vector.load %arg10[%c0_91, %c0_92] : memref<8x64xf32, #tpu.memory_space<vmem>>, vector<8x64xf32>
      tpu.vector_store %arg10[%c0_91, %c0_92], %437 {strides = array<i32>} : memref<8x64xf32, #tpu.memory_space<vmem>>, vector<8x64xf32>,
    } else {
    }
    %c0 = arith.constant 0 : index
    %c0_1 = arith.constant 0 : index
    %3 = vector.load %arg3[%c0, %c0_1] : memref<32x96xbf16, #tpu.memory_space<vmem>>, vector<32x96xbf16>
    %c0_2 = arith.constant 0 : index
    %c0_3 = arith.constant 0 : index
    %4 = vector.load %arg4[%c0_2, %c0_3] : memref<32x96xbf16, #tpu.memory_space<vmem>>, vector<32x96xbf16>
    %c0_4 = arith.constant 0 : index
    %c0_5 = arith.constant 0 : index
    %5 = vector.load %arg5[%c0_4, %c0_5] : memref<32x96xbf16, #tpu.memory_space<vmem>>, vector<32x96xbf16>
    %c0_6 = arith.constant 0 : index
    %c0_7 = arith.constant 0 : index
    %6 = vector.load %arg6[%c0_6, %c0_7] : memref<1x96xf32, #tpu.memory_space<vmem>>, vector<1x96xf32>
    %7 = vector.shape_cast %6 : vector<1x96xf32> to vector<1x96xf32>
    %8 = vector.broadcast %7 : vector<1x96xf32> to vector<8x96xf32>
    %c0_8 = arith.constant 0 : index
    %c0_9 = arith.constant 0 : index
    %9 = vector.load %arg7[%c0_8, %c0_9] : memref<1x96xf32, #tpu.memory_space<vmem>>, vector<1x96xf32>
    %10 = vector.shape_cast %9 : vector<1x96xf32> to vector<1x96xf32>
    %11 = vector.broadcast %10 : vector<1x96xf32> to vector<8x96xf32>
    %c0_10 = arith.constant 0 : index
    %c0_11 = arith.constant 0 : index
    %12 = vector.load %arg8[%c0_10, %c0_11] : memref<1x96xf32, #tpu.memory_space<vmem>>, vector<1x96xf32>
    %13 = vector.shape_cast %12 : vector<1x96xf32> to vector<1x96xf32>
    %14 = vector.broadcast %13 : vector<1x96xf32> to vector<8x96xf32>
    %c0_12 = arith.constant 0 : index
    %c0_13 = arith.constant 0 : index
    %15 = vector.load %arg10[%c0_12, %c0_13] : memref<8x64xf32, #tpu.memory_space<vmem>>, vector<8x64xf32>
    %16 = vector.extract_strided_slice %15 {offsets = [0, 0], sizes = [8, 32], strides = [1, 1]} : vector<8x64xf32> to vector<8x32xf32>
    %17 = vector.extract_strided_slice %15 {offsets = [0, 32], sizes = [8, 32], strides = [1, 1]} : vector<8x64xf32> to vector<8x32xf32>
    %c0_14 = arith.constant 0 : index
    %c0_15 = arith.constant 0 : index
    %c0_16 = arith.constant 0 : index
    %18 = vector.load %arg2[%c0_14, %c0_15, %c0_16] : memref<8x8x96xbf16, #tpu.memory_space<vmem>>, vector<1x8x96xbf16>
    %19 = vector.shape_cast %18 : vector<1x8x96xbf16> to vector<8x96xbf16>
    %20 = arith.extf %19 : vector<8x96xbf16> to vector<8x96xf32>
    %21 = arith.truncf %16 : vector<8x32xf32> to vector<8x32xbf16>
    %cst = arith.constant dense<0.000000e+00> : vector<8x96xf32>
    %22 = tpu.matmul %21, %3, %cst {dimension_numbers = #tpu.dot_dimension_numbers<[1], [0], [0], [1], [0, 0, 1, 1], [], []>} : vector<8x32xbf16>, vector<32x96xbf16>, vector<8x96xf32> -> vector<8x96xf32>
    %23 = arith.addf %22, %8 : vector<8x96xf32>
    %24 = arith.truncf %17 : vector<8x32xf32> to vector<8x32xbf16>
    %cst_17 = arith.constant dense<0.000000e+00> : vector<8x96xf32>
    %25 = tpu.matmul %24, %4, %cst_17 {dimension_numbers = #tpu.dot_dimension_numbers<[1], [0], [0], [1], [0, 0, 1, 1], [], []>} : vector<8x32xbf16>, vector<32x96xbf16>, vector<8x96xf32> -> vector<8x96xf32>
    %26 = arith.addf %25, %11 : vector<8x96xf32>
    %27 = vector.extract_strided_slice %20 {offsets = [0, 0], sizes = [8, 64], strides = [1, 1]} : vector<8x96xf32> to vector<8x64xf32>
    %28 = vector.extract_strided_slice %23 {offsets = [0, 0], sizes = [8, 64], strides = [1, 1]} : vector<8x96xf32> to vector<8x64xf32>
    %29 = arith.addf %27, %28 : vector<8x64xf32>
    %30 = arith.negf %29 : vector<8x64xf32>
    %31 = math.exp %30 : vector<8x64xf32>
    %cst_18 = arith.constant 1.000000e+00 : f32
    %32 = vector.broadcast %cst_18 : f32 to vector<8x64xf32>
    %33 = arith.addf %32, %31 : vector<8x64xf32>
    %34 = arith.divf %32, %33 : vector<8x64xf32>
    %35 = vector.extract_strided_slice %34 {offsets = [0, 0], sizes = [8, 32], strides = [1, 1]} : vector<8x64xf32> to vector<8x32xf32>
    %36 = vector.extract_strided_slice %34 {offsets = [0, 32], sizes = [8, 32], strides = [1, 1]} : vector<8x64xf32> to vector<8x32xf32>
    %37 = vector.extract_strided_slice %20 {offsets = [0, 64], sizes = [8, 32], strides = [1, 1]} : vector<8x96xf32> to vector<8x32xf32>
    %38 = vector.extract_strided_slice %23 {offsets = [0, 64], sizes = [8, 32], strides = [1, 1]} : vector<8x96xf32> to vector<8x32xf32>
    %39 = arith.mulf %35, %38 : vector<8x32xf32>
    %40 = arith.addf %37, %39 : vector<8x32xf32>
    %41 = math.tanh %40 : vector<8x32xf32>
    %cst_19 = arith.constant 1.000000e+00 : f32
    %42 = vector.broadcast %cst_19 : f32 to vector<8x32xf32>
    %43 = arith.subf %42, %36 : vector<8x32xf32>
    %44 = arith.mulf %43, %41 : vector<8x32xf32>
    %45 = arith.mulf %36, %16 : vector<8x32xf32>
    %46 = arith.addf %44, %45 : vector<8x32xf32>
    %47 = arith.truncf %46 : vector<8x32xf32> to vector<8x32xbf16>
    %cst_20 = arith.constant dense<0.000000e+00> : vector<8x96xf32>
    %48 = tpu.matmul %47, %5, %cst_20 {dimension_numbers = #tpu.dot_dimension_numbers<[1], [0], [0], [1], [0, 0, 1, 1], [], []>} : vector<8x32xbf16>, vector<32x96xbf16>, vector<8x96xf32> -> vector<8x96xf32>
    %49 = arith.addf %48, %14 : vector<8x96xf32>
    %50 = vector.extract_strided_slice %49 {offsets = [0, 0], sizes = [8, 64], strides = [1, 1]} : vector<8x96xf32> to vector<8x64xf32>
    %51 = vector.extract_strided_slice %26 {offsets = [0, 0], sizes = [8, 64], strides = [1, 1]} : vector<8x96xf32> to vector<8x64xf32>
    %52 = arith.addf %50, %51 : vector<8x64xf32>
    %53 = arith.negf %52 : vector<8x64xf32>
    %54 = math.exp %53 : vector<8x64xf32>
    %cst_21 = arith.constant 1.000000e+00 : f32
    %55 = vector.broadcast %cst_21 : f32 to vector<8x64xf32>
    %56 = arith.addf %55, %54 : vector<8x64xf32>
    %57 = arith.divf %55, %56 : vector<8x64xf32>
    %58 = vector.extract_strided_slice %57 {offsets = [0, 0], sizes = [8, 32], strides = [1, 1]} : vector<8x64xf32> to vector<8x32xf32>
    %59 = vector.extract_strided_slice %57 {offsets = [0, 32], sizes = [8, 32], strides = [1, 1]} : vector<8x64xf32> to vector<8x32xf32>
    %60 = vector.extract_strided_slice %49 {offsets = [0, 64], sizes = [8, 32], strides = [1, 1]} : vector<8x96xf32> to vector<8x32xf32>
    %61 = vector.extract_strided_slice %26 {offsets = [0, 64], sizes = [8, 32], strides = [1, 1]} : vector<8x96xf32> to vector<8x32xf32>
    %62 = arith.mulf %58, %61 : vector<8x32xf32>
    %63 = arith.addf %60, %62 : vector<8x32xf32>
    %64 = math.tanh %63 : vector<8x32xf32>
    %cst_22 = arith.constant 1.000000e+00 : f32
    %65 = vector.broadcast %cst_22 : f32 to vector<8x32xf32>
    %66 = arith.subf %65, %59 : vector<8x32xf32>
    %67 = arith.mulf %66, %64 : vector<8x32xf32>
    %68 = arith.mulf %59, %17 : vector<8x32xf32>
    %69 = arith.addf %67, %68 : vector<8x32xf32>
    %c1 = arith.constant 1 : index
    %c0_23 = arith.constant 0 : index
    %c0_24 = arith.constant 0 : index
    %70 = vector.load %arg2[%c1, %c0_23, %c0_24] : memref<8x8x96xbf16, #tpu.memory_space<vmem>>, vector<1x8x96xbf16>
    %71 = vector.shape_cast %70 : vector<1x8x96xbf16> to vector<8x96xbf16>
    %72 = arith.extf %71 : vector<8x96xbf16> to vector<8x96xf32>
    %73 = arith.truncf %46 : vector<8x32xf32> to vector<8x32xbf16>
    %cst_25 = arith.constant dense<0.000000e+00> : vector<8x96xf32>
    %74 = tpu.matmul %73, %3, %cst_25 {dimension_numbers = #tpu.dot_dimension_numbers<[1], [0], [0], [1], [0, 0, 1, 1], [], []>} : vector<8x32xbf16>, vector<32x96xbf16>, vector<8x96xf32> -> vector<8x96xf32>
    %75 = arith.addf %74, %8 : vector<8x96xf32>
    %76 = arith.truncf %69 : vector<8x32xf32> to vector<8x32xbf16>
    %cst_26 = arith.constant dense<0.000000e+00> : vector<8x96xf32>
    %77 = tpu.matmul %76, %4, %cst_26 {dimension_numbers = #tpu.dot_dimension_numbers<[1], [0], [0], [1], [0, 0, 1, 1], [], []>} : vector<8x32xbf16>, vector<32x96xbf16>, vector<8x96xf32> -> vector<8x96xf32>
    %78 = arith.addf %77, %11 : vector<8x96xf32>
    %79 = vector.extract_strided_slice %72 {offsets = [0, 0], sizes = [8, 64], strides = [1, 1]} : vector<8x96xf32> to vector<8x64xf32>
    %80 = vector.extract_strided_slice %75 {offsets = [0, 0], sizes = [8, 64], strides = [1, 1]} : vector<8x96xf32> to vector<8x64xf32>
    %81 = arith.addf %79, %80 : vector<8x64xf32>
    %82 = arith.negf %81 : vector<8x64xf32>
    %83 = math.exp %82 : vector<8x64xf32>
    %cst_27 = arith.constant 1.000000e+00 : f32
    %84 = vector.broadcast %cst_27 : f32 to vector<8x64xf32>
    %85 = arith.addf %84, %83 : vector<8x64xf32>
    %86 = arith.divf %84, %85 : vector<8x64xf32>
    %87 = vector.extract_strided_slice %86 {offsets = [0, 0], sizes = [8, 32], strides = [1, 1]} : vector<8x64xf32> to vector<8x32xf32>
    %88 = vector.extract_strided_slice %86 {offsets = [0, 32], sizes = [8, 32], strides = [1, 1]} : vector<8x64xf32> to vector<8x32xf32>
    %89 = vector.extract_strided_slice %72 {offsets = [0, 64], sizes = [8, 32], strides = [1, 1]} : vector<8x96xf32> to vector<8x32xf32>
    %90 = vector.extract_strided_slice %75 {offsets = [0, 64], sizes = [8, 32], strides = [1, 1]} : vector<8x96xf32> to vector<8x32xf32>
    %91 = arith.mulf %87, %90 : vector<8x32xf32>
    %92 = arith.addf %89, %91 : vector<8x32xf32>
    %93 = math.tanh %92 : vector<8x32xf32>
    %cst_28 = arith.constant 1.000000e+00 : f32
    %94 = vector.broadcast %cst_28 : f32 to vector<8x32xf32>
    %95 = arith.subf %94, %88 : vector<8x32xf32>
    %96 = arith.mulf %95, %93 : vector<8x32xf32>
    %97 = arith.mulf %88, %46 : vector<8x32xf32>
    %98 = arith.addf %96, %97 : vector<8x32xf32>
    %99 = arith.truncf %98 : vector<8x32xf32> to vector<8x32xbf16>
    %cst_29 = arith.constant dense<0.000000e+00> : vector<8x96xf32>
    %100 = tpu.matmul %99, %5, %cst_29 {dimension_numbers = #tpu.dot_dimension_numbers<[1], [0], [0], [1], [0, 0, 1, 1], [], []>} : vector<8x32xbf16>, vector<32x96xbf16>, vector<8x96xf32> -> vector<8x96xf32>
    %101 = arith.addf %100, %14 : vector<8x96xf32>
    %102 = vector.extract_strided_slice %101 {offsets = [0, 0], sizes = [8, 64], strides = [1, 1]} : vector<8x96xf32> to vector<8x64xf32>
    %103 = vector.extract_strided_slice %78 {offsets = [0, 0], sizes = [8, 64], strides = [1, 1]} : vector<8x96xf32> to vector<8x64xf32>
    %104 = arith.addf %102, %103 : vector<8x64xf32>
    %105 = arith.negf %104 : vector<8x64xf32>
    %106 = math.exp %105 : vector<8x64xf32>
    %cst_30 = arith.constant 1.000000e+00 : f32
    %107 = vector.broadcast %cst_30 : f32 to vector<8x64xf32>
    %108 = arith.addf %107, %106 : vector<8x64xf32>
    %109 = arith.divf %107, %108 : vector<8x64xf32>
    %110 = vector.extract_strided_slice %109 {offsets = [0, 0], sizes = [8, 32], strides = [1, 1]} : vector<8x64xf32> to vector<8x32xf32>
    %111 = vector.extract_strided_slice %109 {offsets = [0, 32], sizes = [8, 32], strides = [1, 1]} : vector<8x64xf32> to vector<8x32xf32>
    %112 = vector.extract_strided_slice %101 {offsets = [0, 64], sizes = [8, 32], strides = [1, 1]} : vector<8x96xf32> to vector<8x32xf32>
    %113 = vector.extract_strided_slice %78 {offsets = [0, 64], sizes = [8, 32], strides = [1, 1]} : vector<8x96xf32> to vector<8x32xf32>
    %114 = arith.mulf %110, %113 : vector<8x32xf32>
    %115 = arith.addf %112, %114 : vector<8x32xf32>
    %116 = math.tanh %115 : vector<8x32xf32>
    %cst_31 = arith.constant 1.000000e+00 : f32
    %117 = vector.broadcast %cst_31 : f32 to vector<8x32xf32>
    %118 = arith.subf %117, %111 : vector<8x32xf32>
    %119 = arith.mulf %118, %116 : vector<8x32xf32>
    %120 = arith.mulf %111, %69 : vector<8x32xf32>
    %121 = arith.addf %119, %120 : vector<8x32xf32>
    %c2 = arith.constant 2 : index
    %c0_32 = arith.constant 0 : index
    %c0_33 = arith.constant 0 : index
    %122 = vector.load %arg2[%c2, %c0_32, %c0_33] : memref<8x8x96xbf16, #tpu.memory_space<vmem>>, vector<1x8x96xbf16>
    %123 = vector.shape_cast %122 : vector<1x8x96xbf16> to vector<8x96xbf16>
    %124 = arith.extf %123 : vector<8x96xbf16> to vector<8x96xf32>
    %125 = arith.truncf %98 : vector<8x32xf32> to vector<8x32xbf16>
    %cst_34 = arith.constant dense<0.000000e+00> : vector<8x96xf32>
    %126 = tpu.matmul %125, %3, %cst_34 {dimension_numbers = #tpu.dot_dimension_numbers<[1], [0], [0], [1], [0, 0, 1, 1], [], []>} : vector<8x32xbf16>, vector<32x96xbf16>, vector<8x96xf32> -> vector<8x96xf32>
    %127 = arith.addf %126, %8 : vector<8x96xf32>
    %128 = arith.truncf %121 : vector<8x32xf32> to vector<8x32xbf16>
    %cst_35 = arith.constant dense<0.000000e+00> : vector<8x96xf32>
    %129 = tpu.matmul %128, %4, %cst_35 {dimension_numbers = #tpu.dot_dimension_numbers<[1], [0], [0], [1], [0, 0, 1, 1], [], []>} : vector<8x32xbf16>, vector<32x96xbf16>, vector<8x96xf32> -> vector<8x96xf32>
    %130 = arith.addf %129, %11 : vector<8x96xf32>
    %131 = vector.extract_strided_slice %124 {offsets = [0, 0], sizes = [8, 64], strides = [1, 1]} : vector<8x96xf32> to vector<8x64xf32>
    %132 = vector.extract_strided_slice %127 {offsets = [0, 0], sizes = [8, 64], strides = [1, 1]} : vector<8x96xf32> to vector<8x64xf32>
    %133 = arith.addf %131, %132 : vector<8x64xf32>
    %134 = arith.negf %133 : vector<8x64xf32>
    %135 = math.exp %134 : vector<8x64xf32>
    %cst_36 = arith.constant 1.000000e+00 : f32
    %136 = vector.broadcast %cst_36 : f32 to vector<8x64xf32>
    %137 = arith.addf %136, %135 : vector<8x64xf32>
    %138 = arith.divf %136, %137 : vector<8x64xf32>
    %139 = vector.extract_strided_slice %138 {offsets = [0, 0], sizes = [8, 32], strides = [1, 1]} : vector<8x64xf32> to vector<8x32xf32>
    %140 = vector.extract_strided_slice %138 {offsets = [0, 32], sizes = [8, 32], strides = [1, 1]} : vector<8x64xf32> to vector<8x32xf32>
    %141 = vector.extract_strided_slice %124 {offsets = [0, 64], sizes = [8, 32], strides = [1, 1]} : vector<8x96xf32> to vector<8x32xf32>
    %142 = vector.extract_strided_slice %127 {offsets = [0, 64], sizes = [8, 32], strides = [1, 1]} : vector<8x96xf32> to vector<8x32xf32>
    %143 = arith.mulf %139, %142 : vector<8x32xf32>
    %144 = arith.addf %141, %143 : vector<8x32xf32>
    %145 = math.tanh %144 : vector<8x32xf32>
    %cst_37 = arith.constant 1.000000e+00 : f32
    %146 = vector.broadcast %cst_37 : f32 to vector<8x32xf32>
    %147 = arith.subf %146, %140 : vector<8x32xf32>
    %148 = arith.mulf %147, %145 : vector<8x32xf32>
    %149 = arith.mulf %140, %98 : vector<8x32xf32>
    %150 = arith.addf %148, %149 : vector<8x32xf32>
    %151 = arith.truncf %150 : vector<8x32xf32> to vector<8x32xbf16>
    %cst_38 = arith.constant dense<0.000000e+00> : vector<8x96xf32>
    %152 = tpu.matmul %151, %5, %cst_38 {dimension_numbers = #tpu.dot_dimension_numbers<[1], [0], [0], [1], [0, 0, 1, 1], [], []>} : vector<8x32xbf16>, vector<32x96xbf16>, vector<8x96xf32> -> vector<8x96xf32>
    %153 = arith.addf %152, %14 : vector<8x96xf32>
    %154 = vector.extract_strided_slice %153 {offsets = [0, 0], sizes = [8, 64], strides = [1, 1]} : vector<8x96xf32> to vector<8x64xf32>
    %155 = vector.extract_strided_slice %130 {offsets = [0, 0], sizes = [8, 64], strides = [1, 1]} : vector<8x96xf32> to vector<8x64xf32>
    %156 = arith.addf %154, %155 : vector<8x64xf32>
    %157 = arith.negf %156 : vector<8x64xf32>
    %158 = math.exp %157 : vector<8x64xf32>
    %cst_39 = arith.constant 1.000000e+00 : f32
    %159 = vector.broadcast %cst_39 : f32 to vector<8x64xf32>
    %160 = arith.addf %159, %158 : vector<8x64xf32>
    %161 = arith.divf %159, %160 : vector<8x64xf32>
    %162 = vector.extract_strided_slice %161 {offsets = [0, 0], sizes = [8, 32], strides = [1, 1]} : vector<8x64xf32> to vector<8x32xf32>
    %163 = vector.extract_strided_slice %161 {offsets = [0, 32], sizes = [8, 32], strides = [1, 1]} : vector<8x64xf32> to vector<8x32xf32>
    %164 = vector.extract_strided_slice %153 {offsets = [0, 64], sizes = [8, 32], strides = [1, 1]} : vector<8x96xf32> to vector<8x32xf32>
    %165 = vector.extract_strided_slice %130 {offsets = [0, 64], sizes = [8, 32], strides = [1, 1]} : vector<8x96xf32> to vector<8x32xf32>
    %166 = arith.mulf %162, %165 : vector<8x32xf32>
    %167 = arith.addf %164, %166 : vector<8x32xf32>
    %168 = math.tanh %167 : vector<8x32xf32>
    %cst_40 = arith.constant 1.000000e+00 : f32
    %169 = vector.broadcast %cst_40 : f32 to vector<8x32xf32>
    %170 = arith.subf %169, %163 : vector<8x32xf32>
    %171 = arith.mulf %170, %168 : vector<8x32xf32>
    %172 = arith.mulf %163, %121 : vector<8x32xf32>
    %173 = arith.addf %171, %172 : vector<8x32xf32>
    %c3 = arith.constant 3 : index
    %c0_41 = arith.constant 0 : index
    %c0_42 = arith.constant 0 : index
    %174 = vector.load %arg2[%c3, %c0_41, %c0_42] : memref<8x8x96xbf16, #tpu.memory_space<vmem>>, vector<1x8x96xbf16>
    %175 = vector.shape_cast %174 : vector<1x8x96xbf16> to vector<8x96xbf16>
    %176 = arith.extf %175 : vector<8x96xbf16> to vector<8x96xf32>
    %177 = arith.truncf %150 : vector<8x32xf32> to vector<8x32xbf16>
    %cst_43 = arith.constant dense<0.000000e+00> : vector<8x96xf32>
    %178 = tpu.matmul %177, %3, %cst_43 {dimension_numbers = #tpu.dot_dimension_numbers<[1], [0], [0], [1], [0, 0, 1, 1], [], []>} : vector<8x32xbf16>, vector<32x96xbf16>, vector<8x96xf32> -> vector<8x96xf32>
    %179 = arith.addf %178, %8 : vector<8x96xf32>
    %180 = arith.truncf %173 : vector<8x32xf32> to vector<8x32xbf16>
    %cst_44 = arith.constant dense<0.000000e+00> : vector<8x96xf32>
    %181 = tpu.matmul %180, %4, %cst_44 {dimension_numbers = #tpu.dot_dimension_numbers<[1], [0], [0], [1], [0, 0, 1, 1], [], []>} : vector<8x32xbf16>, vector<32x96xbf16>, vector<8x96xf32> -> vector<8x96xf32>
    %182 = arith.addf %181, %11 : vector<8x96xf32>
    %183 = vector.extract_strided_slice %176 {offsets = [0, 0], sizes = [8, 64], strides = [1, 1]} : vector<8x96xf32> to vector<8x64xf32>
    %184 = vector.extract_strided_slice %179 {offsets = [0, 0], sizes = [8, 64], strides = [1, 1]} : vector<8x96xf32> to vector<8x64xf32>
    %185 = arith.addf %183, %184 : vector<8x64xf32>
    %186 = arith.negf %185 : vector<8x64xf32>
    %187 = math.exp %186 : vector<8x64xf32>
    %cst_45 = arith.constant 1.000000e+00 : f32
    %188 = vector.broadcast %cst_45 : f32 to vector<8x64xf32>
    %189 = arith.addf %188, %187 : vector<8x64xf32>
    %190 = arith.divf %188, %189 : vector<8x64xf32>
    %191 = vector.extract_strided_slice %190 {offsets = [0, 0], sizes = [8, 32], strides = [1, 1]} : vector<8x64xf32> to vector<8x32xf32>
    %192 = vector.extract_strided_slice %190 {offsets = [0, 32], sizes = [8, 32], strides = [1, 1]} : vector<8x64xf32> to vector<8x32xf32>
    %193 = vector.extract_strided_slice %176 {offsets = [0, 64], sizes = [8, 32], strides = [1, 1]} : vector<8x96xf32> to vector<8x32xf32>
    %194 = vector.extract_strided_slice %179 {offsets = [0, 64], sizes = [8, 32], strides = [1, 1]} : vector<8x96xf32> to vector<8x32xf32>
    %195 = arith.mulf %191, %194 : vector<8x32xf32>
    %196 = arith.addf %193, %195 : vector<8x32xf32>
    %197 = math.tanh %196 : vector<8x32xf32>
    %cst_46 = arith.constant 1.000000e+00 : f32
    %198 = vector.broadcast %cst_46 : f32 to vector<8x32xf32>
    %199 = arith.subf %198, %192 : vector<8x32xf32>
    %200 = arith.mulf %199, %197 : vector<8x32xf32>
    %201 = arith.mulf %192, %150 : vector<8x32xf32>
    %202 = arith.addf %200, %201 : vector<8x32xf32>
    %203 = arith.truncf %202 : vector<8x32xf32> to vector<8x32xbf16>
    %cst_47 = arith.constant dense<0.000000e+00> : vector<8x96xf32>
    %204 = tpu.matmul %203, %5, %cst_47 {dimension_numbers = #tpu.dot_dimension_numbers<[1], [0], [0], [1], [0, 0, 1, 1], [], []>} : vector<8x32xbf16>, vector<32x96xbf16>, vector<8x96xf32> -> vector<8x96xf32>
    %205 = arith.addf %204, %14 : vector<8x96xf32>
    %206 = vector.extract_strided_slice %205 {offsets = [0, 0], sizes = [8, 64], strides = [1, 1]} : vector<8x96xf32> to vector<8x64xf32>
    %207 = vector.extract_strided_slice %182 {offsets = [0, 0], sizes = [8, 64], strides = [1, 1]} : vector<8x96xf32> to vector<8x64xf32>
    %208 = arith.addf %206, %207 : vector<8x64xf32>
    %209 = arith.negf %208 : vector<8x64xf32>
    %210 = math.exp %209 : vector<8x64xf32>
    %cst_48 = arith.constant 1.000000e+00 : f32
    %211 = vector.broadcast %cst_48 : f32 to vector<8x64xf32>
    %212 = arith.addf %211, %210 : vector<8x64xf32>
    %213 = arith.divf %211, %212 : vector<8x64xf32>
    %214 = vector.extract_strided_slice %213 {offsets = [0, 0], sizes = [8, 32], strides = [1, 1]} : vector<8x64xf32> to vector<8x32xf32>
    %215 = vector.extract_strided_slice %213 {offsets = [0, 32], sizes = [8, 32], strides = [1, 1]} : vector<8x64xf32> to vector<8x32xf32>
    %216 = vector.extract_strided_slice %205 {offsets = [0, 64], sizes = [8, 32], strides = [1, 1]} : vector<8x96xf32> to vector<8x32xf32>
    %217 = vector.extract_strided_slice %182 {offsets = [0, 64], sizes = [8, 32], strides = [1, 1]} : vector<8x96xf32> to vector<8x32xf32>
    %218 = arith.mulf %214, %217 : vector<8x32xf32>
    %219 = arith.addf %216, %218 : vector<8x32xf32>
    %220 = math.tanh %219 : vector<8x32xf32>
    %cst_49 = arith.constant 1.000000e+00 : f32
    %221 = vector.broadcast %cst_49 : f32 to vector<8x32xf32>
    %222 = arith.subf %221, %215 : vector<8x32xf32>
    %223 = arith.mulf %222, %220 : vector<8x32xf32>
    %224 = arith.mulf %215, %173 : vector<8x32xf32>
    %225 = arith.addf %223, %224 : vector<8x32xf32>
    %c4 = arith.constant 4 : index
    %c0_50 = arith.constant 0 : index
    %c0_51 = arith.constant 0 : index
    %226 = vector.load %arg2[%c4, %c0_50, %c0_51] : memref<8x8x96xbf16, #tpu.memory_space<vmem>>, vector<1x8x96xbf16>
    %227 = vector.shape_cast %226 : vector<1x8x96xbf16> to vector<8x96xbf16>
    %228 = arith.extf %227 : vector<8x96xbf16> to vector<8x96xf32>
    %229 = arith.truncf %202 : vector<8x32xf32> to vector<8x32xbf16>
    %cst_52 = arith.constant dense<0.000000e+00> : vector<8x96xf32>
    %230 = tpu.matmul %229, %3, %cst_52 {dimension_numbers = #tpu.dot_dimension_numbers<[1], [0], [0], [1], [0, 0, 1, 1], [], []>} : vector<8x32xbf16>, vector<32x96xbf16>, vector<8x96xf32> -> vector<8x96xf32>
    %231 = arith.addf %230, %8 : vector<8x96xf32>
    %232 = arith.truncf %225 : vector<8x32xf32> to vector<8x32xbf16>
    %cst_53 = arith.constant dense<0.000000e+00> : vector<8x96xf32>
    %233 = tpu.matmul %232, %4, %cst_53 {dimension_numbers = #tpu.dot_dimension_numbers<[1], [0], [0], [1], [0, 0, 1, 1], [], []>} : vector<8x32xbf16>, vector<32x96xbf16>, vector<8x96xf32> -> vector<8x96xf32>
    %234 = arith.addf %233, %11 : vector<8x96xf32>
    %235 = vector.extract_strided_slice %228 {offsets = [0, 0], sizes = [8, 64], strides = [1, 1]} : vector<8x96xf32> to vector<8x64xf32>
    %236 = vector.extract_strided_slice %231 {offsets = [0, 0], sizes = [8, 64], strides = [1, 1]} : vector<8x96xf32> to vector<8x64xf32>
    %237 = arith.addf %235, %236 : vector<8x64xf32>
    %238 = arith.negf %237 : vector<8x64xf32>
    %239 = math.exp %238 : vector<8x64xf32>
    %cst_54 = arith.constant 1.000000e+00 : f32
    %240 = vector.broadcast %cst_54 : f32 to vector<8x64xf32>
    %241 = arith.addf %240, %239 : vector<8x64xf32>
    %242 = arith.divf %240, %241 : vector<8x64xf32>
    %243 = vector.extract_strided_slice %242 {offsets = [0, 0], sizes = [8, 32], strides = [1, 1]} : vector<8x64xf32> to vector<8x32xf32>
    %244 = vector.extract_strided_slice %242 {offsets = [0, 32], sizes = [8, 32], strides = [1, 1]} : vector<8x64xf32> to vector<8x32xf32>
    %245 = vector.extract_strided_slice %228 {offsets = [0, 64], sizes = [8, 32], strides = [1, 1]} : vector<8x96xf32> to vector<8x32xf32>
    %246 = vector.extract_strided_slice %231 {offsets = [0, 64], sizes = [8, 32], strides = [1, 1]} : vector<8x96xf32> to vector<8x32xf32>
    %247 = arith.mulf %243, %246 : vector<8x32xf32>
    %248 = arith.addf %245, %247 : vector<8x32xf32>
    %249 = math.tanh %248 : vector<8x32xf32>
    %cst_55 = arith.constant 1.000000e+00 : f32
    %250 = vector.broadcast %cst_55 : f32 to vector<8x32xf32>
    %251 = arith.subf %250, %244 : vector<8x32xf32>
    %252 = arith.mulf %251, %249 : vector<8x32xf32>
    %253 = arith.mulf %244, %202 : vector<8x32xf32>
    %254 = arith.addf %252, %253 : vector<8x32xf32>
    %255 = arith.truncf %254 : vector<8x32xf32> to vector<8x32xbf16>
    %cst_56 = arith.constant dense<0.000000e+00> : vector<8x96xf32>
    %256 = tpu.matmul %255, %5, %cst_56 {dimension_numbers = #tpu.dot_dimension_numbers<[1], [0], [0], [1], [0, 0, 1, 1], [], []>} : vector<8x32xbf16>, vector<32x96xbf16>, vector<8x96xf32> -> vector<8x96xf32>
    %257 = arith.addf %256, %14 : vector<8x96xf32>
    %258 = vector.extract_strided_slice %257 {offsets = [0, 0], sizes = [8, 64], strides = [1, 1]} : vector<8x96xf32> to vector<8x64xf32>
    %259 = vector.extract_strided_slice %234 {offsets = [0, 0], sizes = [8, 64], strides = [1, 1]} : vector<8x96xf32> to vector<8x64xf32>
    %260 = arith.addf %258, %259 : vector<8x64xf32>
    %261 = arith.negf %260 : vector<8x64xf32>
    %262 = math.exp %261 : vector<8x64xf32>
    %cst_57 = arith.constant 1.000000e+00 : f32
    %263 = vector.broadcast %cst_57 : f32 to vector<8x64xf32>
    %264 = arith.addf %263, %262 : vector<8x64xf32>
    %265 = arith.divf %263, %264 : vector<8x64xf32>
    %266 = vector.extract_strided_slice %265 {offsets = [0, 0], sizes = [8, 32], strides = [1, 1]} : vector<8x64xf32> to vector<8x32xf32>
    %267 = vector.extract_strided_slice %265 {offsets = [0, 32], sizes = [8, 32], strides = [1, 1]} : vector<8x64xf32> to vector<8x32xf32>
    %268 = vector.extract_strided_slice %257 {offsets = [0, 64], sizes = [8, 32], strides = [1, 1]} : vector<8x96xf32> to vector<8x32xf32>
    %269 = vector.extract_strided_slice %234 {offsets = [0, 64], sizes = [8, 32], strides = [1, 1]} : vector<8x96xf32> to vector<8x32xf32>
    %270 = arith.mulf %266, %269 : vector<8x32xf32>
    %271 = arith.addf %268, %270 : vector<8x32xf32>
    %272 = math.tanh %271 : vector<8x32xf32>
    %cst_58 = arith.constant 1.000000e+00 : f32
    %273 = vector.broadcast %cst_58 : f32 to vector<8x32xf32>
    %274 = arith.subf %273, %267 : vector<8x32xf32>
    %275 = arith.mulf %274, %272 : vector<8x32xf32>
    %276 = arith.mulf %267, %225 : vector<8x32xf32>
    %277 = arith.addf %275, %276 : vector<8x32xf32>
    %c5 = arith.constant 5 : index
    %c0_59 = arith.constant 0 : index
    %c0_60 = arith.constant 0 : index
    %278 = vector.load %arg2[%c5, %c0_59, %c0_60] : memref<8x8x96xbf16, #tpu.memory_space<vmem>>, vector<1x8x96xbf16>
    %279 = vector.shape_cast %278 : vector<1x8x96xbf16> to vector<8x96xbf16>
    %280 = arith.extf %279 : vector<8x96xbf16> to vector<8x96xf32>
    %281 = arith.truncf %254 : vector<8x32xf32> to vector<8x32xbf16>
    %cst_61 = arith.constant dense<0.000000e+00> : vector<8x96xf32>
    %282 = tpu.matmul %281, %3, %cst_61 {dimension_numbers = #tpu.dot_dimension_numbers<[1], [0], [0], [1], [0, 0, 1, 1], [], []>} : vector<8x32xbf16>, vector<32x96xbf16>, vector<8x96xf32> -> vector<8x96xf32>
    %283 = arith.addf %282, %8 : vector<8x96xf32>
    %284 = arith.truncf %277 : vector<8x32xf32> to vector<8x32xbf16>
    %cst_62 = arith.constant dense<0.000000e+00> : vector<8x96xf32>
    %285 = tpu.matmul %284, %4, %cst_62 {dimension_numbers = #tpu.dot_dimension_numbers<[1], [0], [0], [1], [0, 0, 1, 1], [], []>} : vector<8x32xbf16>, vector<32x96xbf16>, vector<8x96xf32> -> vector<8x96xf32>
    %286 = arith.addf %285, %11 : vector<8x96xf32>
    %287 = vector.extract_strided_slice %280 {offsets = [0, 0], sizes = [8, 64], strides = [1, 1]} : vector<8x96xf32> to vector<8x64xf32>
    %288 = vector.extract_strided_slice %283 {offsets = [0, 0], sizes = [8, 64], strides = [1, 1]} : vector<8x96xf32> to vector<8x64xf32>
    %289 = arith.addf %287, %288 : vector<8x64xf32>
    %290 = arith.negf %289 : vector<8x64xf32>
    %291 = math.exp %290 : vector<8x64xf32>
    %cst_63 = arith.constant 1.000000e+00 : f32
    %292 = vector.broadcast %cst_63 : f32 to vector<8x64xf32>
    %293 = arith.addf %292, %291 : vector<8x64xf32>
    %294 = arith.divf %292, %293 : vector<8x64xf32>
    %295 = vector.extract_strided_slice %294 {offsets = [0, 0], sizes = [8, 32], strides = [1, 1]} : vector<8x64xf32> to vector<8x32xf32>
    %296 = vector.extract_strided_slice %294 {offsets = [0, 32], sizes = [8, 32], strides = [1, 1]} : vector<8x64xf32> to vector<8x32xf32>
    %297 = vector.extract_strided_slice %280 {offsets = [0, 64], sizes = [8, 32], strides = [1, 1]} : vector<8x96xf32> to vector<8x32xf32>
    %298 = vector.extract_strided_slice %283 {offsets = [0, 64], sizes = [8, 32], strides = [1, 1]} : vector<8x96xf32> to vector<8x32xf32>
    %299 = arith.mulf %295, %298 : vector<8x32xf32>
    %300 = arith.addf %297, %299 : vector<8x32xf32>
    %301 = math.tanh %300 : vector<8x32xf32>
    %cst_64 = arith.constant 1.000000e+00 : f32
    %302 = vector.broadcast %cst_64 : f32 to vector<8x32xf32>
    %303 = arith.subf %302, %296 : vector<8x32xf32>
    %304 = arith.mulf %303, %301 : vector<8x32xf32>
    %305 = arith.mulf %296, %254 : vector<8x32xf32>
    %306 = arith.addf %304, %305 : vector<8x32xf32>
    %307 = arith.truncf %306 : vector<8x32xf32> to vector<8x32xbf16>
    %cst_65 = arith.constant dense<0.000000e+00> : vector<8x96xf32>
    %308 = tpu.matmul %307, %5, %cst_65 {dimension_numbers = #tpu.dot_dimension_numbers<[1], [0], [0], [1], [0, 0, 1, 1], [], []>} : vector<8x32xbf16>, vector<32x96xbf16>, vector<8x96xf32> -> vector<8x96xf32>
    %309 = arith.addf %308, %14 : vector<8x96xf32>
    %310 = vector.extract_strided_slice %309 {offsets = [0, 0], sizes = [8, 64], strides = [1, 1]} : vector<8x96xf32> to vector<8x64xf32>
    %311 = vector.extract_strided_slice %286 {offsets = [0, 0], sizes = [8, 64], strides = [1, 1]} : vector<8x96xf32> to vector<8x64xf32>
    %312 = arith.addf %310, %311 : vector<8x64xf32>
    %313 = arith.negf %312 : vector<8x64xf32>
    %314 = math.exp %313 : vector<8x64xf32>
    %cst_66 = arith.constant 1.000000e+00 : f32
    %315 = vector.broadcast %cst_66 : f32 to vector<8x64xf32>
    %316 = arith.addf %315, %314 : vector<8x64xf32>
    %317 = arith.divf %315, %316 : vector<8x64xf32>
    %318 = vector.extract_strided_slice %317 {offsets = [0, 0], sizes = [8, 32], strides = [1, 1]} : vector<8x64xf32> to vector<8x32xf32>
    %319 = vector.extract_strided_slice %317 {offsets = [0, 32], sizes = [8, 32], strides = [1, 1]} : vector<8x64xf32> to vector<8x32xf32>
    %320 = vector.extract_strided_slice %309 {offsets = [0, 64], sizes = [8, 32], strides = [1, 1]} : vector<8x96xf32> to vector<8x32xf32>
    %321 = vector.extract_strided_slice %286 {offsets = [0, 64], sizes = [8, 32], strides = [1, 1]} : vector<8x96xf32> to vector<8x32xf32>
    %322 = arith.mulf %318, %321 : vector<8x32xf32>
    %323 = arith.addf %320, %322 : vector<8x32xf32>
    %324 = math.tanh %323 : vector<8x32xf32>
    %cst_67 = arith.constant 1.000000e+00 : f32
    %325 = vector.broadcast %cst_67 : f32 to vector<8x32xf32>
    %326 = arith.subf %325, %319 : vector<8x32xf32>
    %327 = arith.mulf %326, %324 : vector<8x32xf32>
    %328 = arith.mulf %319, %277 : vector<8x32xf32>
    %329 = arith.addf %327, %328 : vector<8x32xf32>
    %c6 = arith.constant 6 : index
    %c0_68 = arith.constant 0 : index
    %c0_69 = arith.constant 0 : index
    %330 = vector.load %arg2[%c6, %c0_68, %c0_69] : memref<8x8x96xbf16, #tpu.memory_space<vmem>>, vector<1x8x96xbf16>
    %331 = vector.shape_cast %330 : vector<1x8x96xbf16> to vector<8x96xbf16>
    %332 = arith.extf %331 : vector<8x96xbf16> to vector<8x96xf32>
    %333 = arith.truncf %306 : vector<8x32xf32> to vector<8x32xbf16>
    %cst_70 = arith.constant dense<0.000000e+00> : vector<8x96xf32>
    %334 = tpu.matmul %333, %3, %cst_70 {dimension_numbers = #tpu.dot_dimension_numbers<[1], [0], [0], [1], [0, 0, 1, 1], [], []>} : vector<8x32xbf16>, vector<32x96xbf16>, vector<8x96xf32> -> vector<8x96xf32>
    %335 = arith.addf %334, %8 : vector<8x96xf32>
    %336 = arith.truncf %329 : vector<8x32xf32> to vector<8x32xbf16>
    %cst_71 = arith.constant dense<0.000000e+00> : vector<8x96xf32>
    %337 = tpu.matmul %336, %4, %cst_71 {dimension_numbers = #tpu.dot_dimension_numbers<[1], [0], [0], [1], [0, 0, 1, 1], [], []>} : vector<8x32xbf16>, vector<32x96xbf16>, vector<8x96xf32> -> vector<8x96xf32>
    %338 = arith.addf %337, %11 : vector<8x96xf32>
    %339 = vector.extract_strided_slice %332 {offsets = [0, 0], sizes = [8, 64], strides = [1, 1]} : vector<8x96xf32> to vector<8x64xf32>
    %340 = vector.extract_strided_slice %335 {offsets = [0, 0], sizes = [8, 64], strides = [1, 1]} : vector<8x96xf32> to vector<8x64xf32>
    %341 = arith.addf %339, %340 : vector<8x64xf32>
    %342 = arith.negf %341 : vector<8x64xf32>
    %343 = math.exp %342 : vector<8x64xf32>
    %cst_72 = arith.constant 1.000000e+00 : f32
    %344 = vector.broadcast %cst_72 : f32 to vector<8x64xf32>
    %345 = arith.addf %344, %343 : vector<8x64xf32>
    %346 = arith.divf %344, %345 : vector<8x64xf32>
    %347 = vector.extract_strided_slice %346 {offsets = [0, 0], sizes = [8, 32], strides = [1, 1]} : vector<8x64xf32> to vector<8x32xf32>
    %348 = vector.extract_strided_slice %346 {offsets = [0, 32], sizes = [8, 32], strides = [1, 1]} : vector<8x64xf32> to vector<8x32xf32>
    %349 = vector.extract_strided_slice %332 {offsets = [0, 64], sizes = [8, 32], strides = [1, 1]} : vector<8x96xf32> to vector<8x32xf32>
    %350 = vector.extract_strided_slice %335 {offsets = [0, 64], sizes = [8, 32], strides = [1, 1]} : vector<8x96xf32> to vector<8x32xf32>
    %351 = arith.mulf %347, %350 : vector<8x32xf32>
    %352 = arith.addf %349, %351 : vector<8x32xf32>
    %353 = math.tanh %352 : vector<8x32xf32>
    %cst_73 = arith.constant 1.000000e+00 : f32
    %354 = vector.broadcast %cst_73 : f32 to vector<8x32xf32>
    %355 = arith.subf %354, %348 : vector<8x32xf32>
    %356 = arith.mulf %355, %353 : vector<8x32xf32>
    %357 = arith.mulf %348, %306 : vector<8x32xf32>
    %358 = arith.addf %356, %357 : vector<8x32xf32>
    %359 = arith.truncf %358 : vector<8x32xf32> to vector<8x32xbf16>
    %cst_74 = arith.constant dense<0.000000e+00> : vector<8x96xf32>
    %360 = tpu.matmul %359, %5, %cst_74 {dimension_numbers = #tpu.dot_dimension_numbers<[1], [0], [0], [1], [0, 0, 1, 1], [], []>} : vector<8x32xbf16>, vector<32x96xbf16>, vector<8x96xf32> -> vector<8x96xf32>
    %361 = arith.addf %360, %14 : vector<8x96xf32>
    %362 = vector.extract_strided_slice %361 {offsets = [0, 0], sizes = [8, 64], strides = [1, 1]} : vector<8x96xf32> to vector<8x64xf32>
    %363 = vector.extract_strided_slice %338 {offsets = [0, 0], sizes = [8, 64], strides = [1, 1]} : vector<8x96xf32> to vector<8x64xf32>
    %364 = arith.addf %362, %363 : vector<8x64xf32>
    %365 = arith.negf %364 : vector<8x64xf32>
    %366 = math.exp %365 : vector<8x64xf32>
    %cst_75 = arith.constant 1.000000e+00 : f32
    %367 = vector.broadcast %cst_75 : f32 to vector<8x64xf32>
    %368 = arith.addf %367, %366 : vector<8x64xf32>
    %369 = arith.divf %367, %368 : vector<8x64xf32>
    %370 = vector.extract_strided_slice %369 {offsets = [0, 0], sizes = [8, 32], strides = [1, 1]} : vector<8x64xf32> to vector<8x32xf32>
    %371 = vector.extract_strided_slice %369 {offsets = [0, 32], sizes = [8, 32], strides = [1, 1]} : vector<8x64xf32> to vector<8x32xf32>
    %372 = vector.extract_strided_slice %361 {offsets = [0, 64], sizes = [8, 32], strides = [1, 1]} : vector<8x96xf32> to vector<8x32xf32>
    %373 = vector.extract_strided_slice %338 {offsets = [0, 64], sizes = [8, 32], strides = [1, 1]} : vector<8x96xf32> to vector<8x32xf32>
    %374 = arith.mulf %370, %373 : vector<8x32xf32>
    %375 = arith.addf %372, %374 : vector<8x32xf32>
    %376 = math.tanh %375 : vector<8x32xf32>
    %cst_76 = arith.constant 1.000000e+00 : f32
    %377 = vector.broadcast %cst_76 : f32 to vector<8x32xf32>
    %378 = arith.subf %377, %371 : vector<8x32xf32>
    %379 = arith.mulf %378, %376 : vector<8x32xf32>
    %380 = arith.mulf %371, %329 : vector<8x32xf32>
    %381 = arith.addf %379, %380 : vector<8x32xf32>
    %c7 = arith.constant 7 : index
    %c0_77 = arith.constant 0 : index
    %c0_78 = arith.constant 0 : index
    %382 = vector.load %arg2[%c7, %c0_77, %c0_78] : memref<8x8x96xbf16, #tpu.memory_space<vmem>>, vector<1x8x96xbf16>
    %383 = vector.shape_cast %382 : vector<1x8x96xbf16> to vector<8x96xbf16>
    %384 = arith.extf %383 : vector<8x96xbf16> to vector<8x96xf32>
    %385 = arith.truncf %358 : vector<8x32xf32> to vector<8x32xbf16>
    %cst_79 = arith.constant dense<0.000000e+00> : vector<8x96xf32>
    %386 = tpu.matmul %385, %3, %cst_79 {dimension_numbers = #tpu.dot_dimension_numbers<[1], [0], [0], [1], [0, 0, 1, 1], [], []>} : vector<8x32xbf16>, vector<32x96xbf16>, vector<8x96xf32> -> vector<8x96xf32>
    %387 = arith.addf %386, %8 : vector<8x96xf32>
    %388 = arith.truncf %381 : vector<8x32xf32> to vector<8x32xbf16>
    %cst_80 = arith.constant dense<0.000000e+00> : vector<8x96xf32>
    %389 = tpu.matmul %388, %4, %cst_80 {dimension_numbers = #tpu.dot_dimension_numbers<[1], [0], [0], [1], [0, 0, 1, 1], [], []>} : vector<8x32xbf16>, vector<32x96xbf16>, vector<8x96xf32> -> vector<8x96xf32>
    %390 = arith.addf %389, %11 : vector<8x96xf32>
    %391 = vector.extract_strided_slice %384 {offsets = [0, 0], sizes = [8, 64], strides = [1, 1]} : vector<8x96xf32> to vector<8x64xf32>
    %392 = vector.extract_strided_slice %387 {offsets = [0, 0], sizes = [8, 64], strides = [1, 1]} : vector<8x96xf32> to vector<8x64xf32>
    %393 = arith.addf %391, %392 : vector<8x64xf32>
    %394 = arith.negf %393 : vector<8x64xf32>
    %395 = math.exp %394 : vector<8x64xf32>
    %cst_81 = arith.constant 1.000000e+00 : f32
    %396 = vector.broadcast %cst_81 : f32 to vector<8x64xf32>
    %397 = arith.addf %396, %395 : vector<8x64xf32>
    %398 = arith.divf %396, %397 : vector<8x64xf32>
    %399 = vector.extract_strided_slice %398 {offsets = [0, 0], sizes = [8, 32], strides = [1, 1]} : vector<8x64xf32> to vector<8x32xf32>
    %400 = vector.extract_strided_slice %398 {offsets = [0, 32], sizes = [8, 32], strides = [1, 1]} : vector<8x64xf32> to vector<8x32xf32>
    %401 = vector.extract_strided_slice %384 {offsets = [0, 64], sizes = [8, 32], strides = [1, 1]} : vector<8x96xf32> to vector<8x32xf32>
    %402 = vector.extract_strided_slice %387 {offsets = [0, 64], sizes = [8, 32], strides = [1, 1]} : vector<8x96xf32> to vector<8x32xf32>
    %403 = arith.mulf %399, %402 : vector<8x32xf32>
    %404 = arith.addf %401, %403 : vector<8x32xf32>
    %405 = math.tanh %404 : vector<8x32xf32>
    %cst_82 = arith.constant 1.000000e+00 : f32
    %406 = vector.broadcast %cst_82 : f32 to vector<8x32xf32>
    %407 = arith.subf %406, %400 : vector<8x32xf32>
    %408 = arith.mulf %407, %405 : vector<8x32xf32>
    %409 = arith.mulf %400, %358 : vector<8x32xf32>
    %410 = arith.addf %408, %409 : vector<8x32xf32>
    %411 = arith.truncf %410 : vector<8x32xf32> to vector<8x32xbf16>
    %cst_83 = arith.constant dense<0.000000e+00> : vector<8x96xf32>
    %412 = tpu.matmul %411, %5, %cst_83 {dimension_numbers = #tpu.dot_dimension_numbers<[1], [0], [0], [1], [0, 0, 1, 1], [], []>} : vector<8x32xbf16>, vector<32x96xbf16>, vector<8x96xf32> -> vector<8x96xf32>
    %413 = arith.addf %412, %14 : vector<8x96xf32>
    %414 = vector.extract_strided_slice %413 {offsets = [0, 0], sizes = [8, 64], strides = [1, 1]} : vector<8x96xf32> to vector<8x64xf32>
    %415 = vector.extract_strided_slice %390 {offsets = [0, 0], sizes = [8, 64], strides = [1, 1]} : vector<8x96xf32> to vector<8x64xf32>
    %416 = arith.addf %414, %415 : vector<8x64xf32>
    %417 = arith.negf %416 : vector<8x64xf32>
    %418 = math.exp %417 : vector<8x64xf32>
    %cst_84 = arith.constant 1.000000e+00 : f32
    %419 = vector.broadcast %cst_84 : f32 to vector<8x64xf32>
    %420 = arith.addf %419, %418 : vector<8x64xf32>
    %421 = arith.divf %419, %420 : vector<8x64xf32>
    %422 = vector.extract_strided_slice %421 {offsets = [0, 0], sizes = [8, 32], strides = [1, 1]} : vector<8x64xf32> to vector<8x32xf32>
    %423 = vector.extract_strided_slice %421 {offsets = [0, 32], sizes = [8, 32], strides = [1, 1]} : vector<8x64xf32> to vector<8x32xf32>
    %424 = vector.extract_strided_slice %413 {offsets = [0, 64], sizes = [8, 32], strides = [1, 1]} : vector<8x96xf32> to vector<8x32xf32>
    %425 = vector.extract_strided_slice %390 {offsets = [0, 64], sizes = [8, 32], strides = [1, 1]} : vector<8x96xf32> to vector<8x32xf32>
    %426 = arith.mulf %422, %425 : vector<8x32xf32>
    %427 = arith.addf %424, %426 : vector<8x32xf32>
    %428 = math.tanh %427 : vector<8x32xf32>
    %cst_85 = arith.constant 1.000000e+00 : f32
    %429 = vector.broadcast %cst_85 : f32 to vector<8x32xf32>
    %430 = arith.subf %429, %423 : vector<8x32xf32>
    %431 = arith.mulf %430, %428 : vector<8x32xf32>
    %432 = arith.mulf %423, %381 : vector<8x32xf32>
    %433 = arith.addf %431, %432 : vector<8x32xf32>
    %434 = tpu.concatenate %410, %433 in 1 : vector<8x32xf32>, vector<8x32xf32> -> vector<8x64xf32>
    %c0_86 = arith.constant 0 : index
    %c0_87 = arith.constant 0 : index
    %435 = vector.load %arg10[%c0_86, %c0_87] : memref<8x64xf32, #tpu.memory_space<vmem>>, vector<8x64xf32>
    tpu.vector_store %arg10[%c0_86, %c0_87], %434 {strides = array<i32>} : memref<8x64xf32, #tpu.memory_space<vmem>>, vector<8x64xf32>,
    %c0_88 = arith.constant 0 : index
    %c0_89 = arith.constant 0 : index
    %436 = vector.load %arg9[%c0_88, %c0_89] : memref<8x32xf32, #tpu.memory_space<vmem>>, vector<8x32xf32>
    tpu.vector_store %arg9[%c0_88, %c0_89], %433 {strides = array<i32>} : memref<8x32xf32, #tpu.memory_space<vmem>>, vector<8x32xf32>,
    return
  }
  func.func @transform_0(%arg0: i32, %arg1: i32) -> (i32, i32, i32) {
    %c0_i32 = arith.constant 0 : i32
    %c0_i32_0 = arith.constant 0 : i32
    return %arg1, %arg0, %c0_i32 : i32, i32, i32
  }
  func.func @transform_1(%arg0: i32, %arg1: i32) -> (i32, i32) {
    %c0_i32 = arith.constant 0 : i32
    %c0_i32_0 = arith.constant 0 : i32
    %c0_i32_1 = arith.constant 0 : i32
    return %c0_i32, %c0_i32_0 : i32, i32
  }
  func.func @transform_2(%arg0: i32, %arg1: i32) -> (i32, i32) {
    %c0_i32 = arith.constant 0 : i32
    %c0_i32_0 = arith.constant 0 : i32
    %c0_i32_1 = arith.constant 0 : i32
    return %c0_i32, %c0_i32_0 : i32, i32
  }
  func.func @transform_3(%arg0: i32, %arg1: i32) -> (i32, i32) {
    %c0_i32 = arith.constant 0 : i32
    %c0_i32_0 = arith.constant 0 : i32
    %c0_i32_1 = arith.constant 0 : i32
    return %c0_i32, %c0_i32_0 : i32, i32
  }
  func.func @transform_4(%arg0: i32, %arg1: i32) -> (i32, i32) {
    %c0_i32 = arith.constant 0 : i32
    %c0_i32_0 = arith.constant 0 : i32
    %c0_i32_1 = arith.constant 0 : i32
    return %c0_i32, %c0_i32_0 : i32, i32
  }
  func.func @transform_5(%arg0: i32, %arg1: i32) -> (i32, i32) {
    %c0_i32 = arith.constant 0 : i32
    %c0_i32_0 = arith.constant 0 : i32
    %c0_i32_1 = arith.constant 0 : i32
    return %c0_i32, %c0_i32_0 : i32, i32
  }
  func.func @transform_6(%arg0: i32, %arg1: i32) -> (i32, i32) {
    %c0_i32 = arith.constant 0 : i32
    %c0_i32_0 = arith.constant 0 : i32
    %c0_i32_1 = arith.constant 0 : i32
    return %c0_i32, %c0_i32_0 : i32, i32
  }
  func.func @transform_7(%arg0: i32, %arg1: i32) -> (i32, i32) {
    %c0_i32 = arith.constant 0 : i32
    %c0_i32_0 = arith.constant 0 : i32
    return %arg0, %c0_i32 : i32, i32
  }
}

</mosaic_0001>

<bundles_post_ra>
// kernel: critic_forward.1
= control target key start
LH: loop header
LB: loop body
LE: loop exit
PB: predicated region body
PF: predicated region fallthrough
CT: control target
= control target key end

     0   :  { %vm31_vm0 = vcmask 523264   ;;  %v1372_v1 = vmov 0.0   ;;  %vm73_vm1 = vcmask 261120   ;;  %s1374_s9 = smov 96   ;;  %s1375_s10 = smov 32   ;;  %s1743_s1 = inlined_call_operand.vmem [shape: bf16[32,96], index: 1, kind: input, shape index: {}]   ;;  %s1744_s4 = inlined_call_operand.vmem [shape: f32[1,96], index: 4, kind: input, shape index: {}]   ;;  %s1745_s0 = inlined_call_operand.vmem [shape: bf16[8,8,96], index: 0, kind: input, shape index: {}]   ;;  %s1746_s5 = inlined_call_operand.vmem [shape: f32[1,96], index: 5, kind: input, shape index: {}]   ;;  %s1747_s2 = inlined_call_operand.vmem [shape: bf16[32,96], index: 2, kind: input, shape index: {}]   ;;  %s1748_s3 = inlined_call_operand.vmem [shape: bf16[32,96], index: 3, kind: input, shape index: {}]   ;;  %s1749_s6 = inlined_call_operand.vmem [shape: f32[1,96], index: 6, kind: input, shape index: {}]   ;;  %s1750_s7 = inlined_call_operand.vmem [shape: f32[8,32], index: 7, kind: output, shape index: {}]  }
   0x1   :  { %v1419_v0 = vld [vmem:[%s1743_s1 + $0x8] sm:$0xff]  ;;  %32 = vst.msk [vmem:[#allocation2] sm:$0xff] %vm31_vm0, %v1372_v1  ;;  %v1426_v2 = vld [vmem:[%s1743_s1] sm:$0xff]  ;;  %s1373_s1 = smov 64  }
   0x2   :  { %83 = vmatpush.bf16.msra.mxu0 %v1419_v0  ;;  %244 = vmatpush.bf16.msra.mxu3 %v1419_v0  ;;  %v1439_v5 = vld [vmem:[%s1744_s4] ss:$0 sm:$0xff]  ;;  %v1453_v30 = vld [vmem:[%s1747_s2 + $0x8] sm:$0xff] }
   0x3   :  { %v58_v9 = vld [vmem:[%s1745_s0] sm:$0xf]  ;;  %v1458_v31 = vld [vmem:[%s1748_s3 + $0x8] sm:$0xff]  ;;  %114 = vmatpush.bf16.msra.mxu1 %v1453_v30 }
   0x4   :  { %v59_v10 = vunpack.c.l.bf16 %v58_v9  ;;  %v1464_v32 = vld [vmem:[%s1747_s2] sm:$0xff]  ;;  %189 = vmatpush.bf16.msra.mxu2 %v1458_v31 }
   0x5   :  { %v1470_v33 = vld [vmem:[%s1748_s3] sm:$0xff] }
   0x6   :  { %84 = vmatpush.bf16.msra.mxu0 %v1426_v2  ;;  %245 = vmatpush.bf16.msra.mxu3 %v1426_v2  ;;  %v1501_v43 = vld [vmem:[%s1746_s5] ss:$0 sm:$0xff] }
   0x7   :  { %115 = vmatpush.bf16.msra.mxu1 %v1464_v32  ;;  %v1508_v47 = vld [vmem:[%s1749_s6] ss:$0 sm:$0xff] }
   0x8   :  { %v1431_v3 = vld [vmem:[#allocation2] sm:$0xff]  ;;  %190 = vmatpush.bf16.msra.mxu2 %v1470_v33 }
   0x9   :  { %v60_v4 = vpack.c.bf16 %v1431_v3, %v1431_v3 }
   0xa   :  { %264 = vmatpush.bf16.msrb.mxu0 %v1453_v30  ;;  %398 = vmatpush.bf16.msrb.mxu3 %v1453_v30 }
   0xb   :  { %1197 = vmatmul.msk.bf16.vlgmr.msra.gmra.mxu0 %vm73_vm1, %v60_v4  ;;  %91 = vrot.lane.b32.xlu2 %v60_v4, %s1374_s9 }
   0xc   :  { %323 = vmatpush.bf16.msrb.mxu1 %v1458_v31  ;;  %378 = vmatpush.bf16.msrb.mxu2 %v1419_v0 }
   0xe   :  { %265 = vmatpush.bf16.msrb.mxu0 %v1464_v32  ;;  %399 = vmatpush.bf16.msrb.mxu3 %v1464_v32 }
  0x10   :  { %324 = vmatpush.bf16.msrb.mxu1 %v1470_v33  ;;  %379 = vmatpush.bf16.msrb.mxu2 %v1426_v2 }
  0x12   :  { %457 = vmatpush.bf16.msra.mxu0 %v1458_v31 }
  0x16   :  { %458 = vmatpush.bf16.msra.mxu0 %v1470_v33 }
  0x65   :  { %v92_v34 = vpop.permute.xlu2 %91 }
  0x66   :  { %1206 = vmatmul.msk.bf16.vlgmr.msra.gmra.mxu1 %vm73_vm1, %v92_v34 }
  0x67   :  { %512 = vmatpush.bf16.msra.mxu1 %v1419_v0 }
  0x6b   :  { %513 = vmatpush.bf16.msra.mxu1 %v1426_v2 }
  0x88   :  { %v86_v6 = vpop.f32.mrf.mxu0 }
  0x89   :  { %v87_v7 = vadd.f32 %v1439_v5, %v86_v6 }
  0x8b   :  { %142 = vrot.lane.b32.xlu0 %v87_v7, %s1373_s1  ;;  %v121_v11 = vadd.f32 %v87_v7, %v59_v10 }
  0x8d   :  { %v1207_v12 = vmul.f32 -1.442695, %v121_v11 }
  0x8f   :  { %1273 = vpow2.f32 %v1207_v12 }
  0x90   :  { %v88_v8 = vpop.f32.mrf.mxu0 }
  0x95   :  { %v1274_v13 = vpop.eup %1273 }
  0x96   :  { %v125_v14 = vadd.f32 1.0, %v1274_v13 }
  0x98   :  { %1275 = vrcp.f32 %v125_v14  ;;  %v137_v20 = vand.u32 2147483648, %v125_v14  ;;  %vm131_vm3 = vweird.f32 %v125_v14  ;;  %v135_v21 = vand.u32 2147483647, %v125_v14 }
  0x9a   :  { %v138_v23 = vor.u32 1.1754944e-38, %v137_v20  ;;  %vm136_vm5 = vcmp.eq.f32.partialorder %v135_v21, 8.507059e+37 }
  0x9e   :  { %v1276_v15 = vpop.eup %1275 }
  0x9f   :  { %v127_v16 = vmul.f32 %v1276_v15, %v125_v14  ;;  %vm132_vm2 = vweird.f32 %v1276_v15 }
  0xa0   :  { %vm133_vm4 = vmor %vm131_vm3, %vm132_vm2 }
  0xa1   :  { %v128_v17 = vsub.f32 1.0, %v127_v16 }
  0xa3   :  { %v129_v18 = vmul.f32 %v1276_v15, %v128_v17 }
  0xa5   :  { %v130_v19 = vadd.f32 %v1276_v15, %v129_v18 }
  0xa7   :  { %v134_v22 = vsel %vm133_vm4, %v1276_v15, %v130_v19 }
  0xa8   :  { %v139_v25 = vsel %vm136_vm5, %v138_v23, %v134_v22 }
  0xa9   :  { %v152_v36 = vsub.f32 1.0, %v139_v25 }
  0xe3   :  { %v117_v44 = vpop.f32.mrf.mxu1 }
  0xe4   :  { %v118_v45 = vadd.f32 %v1501_v43, %v117_v44 }
  0xeb   :  { %v119_v46 = vpop.f32.mrf.mxu1 }
  0xfd   :  { %v143_v24 = vpop.permute.xlu0 %142 }
  0xfe   :  { %v145_v26 = vmul.f32 %v143_v24, %v139_v25 }
 0x100   :  { %147 = vrot.lane.b32.xlu0 %v145_v26, %s1373_s1 }
 0x108   :  { %217 = vrot.lane.b32.xlu0 %v118_v45, %s1373_s1 }
 0x172   :  { %v148_v27 = vpop.permute.xlu0 %147 }
 0x173   :  { %v150_v28 = vadd.f32 %v148_v27, %v59_v10  ;;  %v1517_v10 = vld [vmem:[%s1745_s0 + $0x4] sm:$0xff]  }
 0x174   :  { %v237_v11 = vunpack.c.l.bf16 %v1517_v10 }
 0x175   :  { %1277 = vtanh.f32 %v150_v28 }
 0x17a   :  { %v218_v6 = vpop.permute.xlu0 %217 }
 0x17b   :  { %v1278_v29 = vpop.eup %1277 }
 0x17c   :  { %154 = vrot.lane.b32.xlu1 %v1278_v29, %s1374_s9 }
 0x184   :  { %159 = vrot.lane.b32.xlu1 %v1431_v3, %s1375_s10 }
 0x1ee   :  { %v155_v35 = vpop.permute.xlu1 %154 }
 0x1ef   :  { %v157_v38 = vmul.f32 %v155_v35, %v152_v36 }
 0x1f6   :  { %v160_v37 = vpop.permute.xlu1 %159 }
 0x1f7   :  { %v162_v39 = vmul.f32 %v160_v37, %v139_v25 }
 0x1f9   :  { %v1487_v40 = vadd.f32 %v162_v39, %v157_v38 }
 0x1fb   :  { %v164_v41 = vpack.c.bf16 %v1487_v40, %v1487_v40 }
 0x1fd   :  { %166 = vrot.lane.b32.xlu2 %v164_v41, %s1374_s9 }
 0x257   :  { %v167_v42 = vpop.permute.xlu2 %166 }
 0x258   :  { %1216 = vmatmul.msk.bf16.vlgmr.msra.gmra.mxu2 %vm73_vm1, %v167_v42  ;;  %1219 = vmatmul.msk.bf16.vlgmr.msra.gmra.mxu3 %vm73_vm1, %v167_v42 }
 0x259   :  { %532 = vmatpush.bf16.msra.mxu2 %v1453_v30  ;;  %591 = vmatpush.bf16.msra.mxu3 %v1458_v31 }
 0x25d   :  { %533 = vmatpush.bf16.msra.mxu2 %v1464_v32  ;;  %592 = vmatpush.bf16.msra.mxu3 %v1470_v33 }
 0x2db   :  { %v192_v48 = vpop.f32.mrf.mxu2  ;;  %v247_v49 = vpop.f32.mrf.mxu3 }
 0x2dc   :  { %v193_v50 = vadd.f32 %v1508_v47, %v192_v48  ;;  %v248_v51 = vadd.f32 %v1439_v5, %v247_v49 }
 0x2de   :  { %v196_v52 = vadd.f32 %v193_v50, %v118_v45  ;;  %292 = vrot.lane.b32.xlu1 %v248_v51, %s1373_s1  ;;  %v271_v12 = vadd.f32 %v248_v51, %v237_v11 }
 0x2e0   :  { %v1217_v53 = vmul.f32 -1.442695, %v196_v52  ;;  %v1221_v13 = vmul.f32 -1.442695, %v271_v12 }
 0x2e2   :  { %1279 = vpow2.f32 %v1217_v53 }
 0x2e3   :  { %v194_v54 = vpop.f32.mrf.mxu2  ;;  %v249_v55 = vpop.f32.mrf.mxu3 }
 0x2e8   :  { %v1280_v56 = vpop.eup %1279 }
 0x2e9   :  { %v200_v57 = vadd.f32 1.0, %v1280_v56 }
 0x2eb   :  { %1281 = vrcp.f32 %v200_v57  ;;  %v212_v61 = vand.u32 2147483648, %v200_v57  ;;  %v210_v63 = vand.u32 2147483647, %v200_v57  ;;  %vm206_vm7 = vweird.f32 %v200_v57 }
 0x2ec   :  { %1283 = vpow2.f32 %v1221_v13 }
 0x2ed   :  { %v213_v4 = vor.u32 1.1754944e-38, %v212_v61  ;;  %vm211_vm9 = vcmp.eq.f32.partialorder %v210_v63, 8.507059e+37 }
 0x2f1   :  { %v1282_v58 = vpop.eup %1281 }
 0x2f2   :  { %v202_v59 = vmul.f32 %v1282_v58, %v200_v57  ;;  %vm207_vm6 = vweird.f32 %v1282_v58  ;;  %v1284_v14 = vpop.eup %1283 }
 0x2f3   :  { %vm208_vm8 = vmor %vm206_vm7, %vm207_vm6  ;;  %v275_v15 = vadd.f32 1.0, %v1284_v14 }
 0x2f4   :  { %v203_v60 = vsub.f32 1.0, %v202_v59 }
 0x2f5   :  { %1285 = vrcp.f32 %v275_v15  ;;  %v287_v21 = vand.u32 2147483648, %v275_v15  ;;  %vm281_vm11 = vweird.f32 %v275_v15  ;;  %v285_v22 = vand.u32 2147483647, %v275_v15 }
 0x2f6   :  { %v204_v62 = vmul.f32 %v1282_v58, %v203_v60 }
 0x2f7   :  { %v288_v24 = vor.u32 1.1754944e-38, %v287_v21  ;;  %vm286_vm13 = vcmp.eq.f32.partialorder %v285_v22, 8.507059e+37 }
 0x2f8   :  { %v205_v1 = vadd.f32 %v1282_v58, %v204_v62 }
 0x2fa   :  { %v209_v7 = vsel %vm208_vm8, %v1282_v58, %v205_v1 }
 0x2fb   :  { %v214_v8 = vsel %vm211_vm9, %v213_v4, %v209_v7  ;;  %v1286_v16 = vpop.eup %1285 }
 0x2fc   :  { %v220_v9 = vmul.f32 %v218_v6, %v214_v8  ;;  %v277_v17 = vmul.f32 %v1286_v16, %v275_v15  ;;  %vm282_vm10 = vweird.f32 %v1286_v16  ;;  %v227_v38 = vsub.f32 1.0, %v214_v8 }
 0x2fd   :  { %vm283_vm12 = vmor %vm281_vm11, %vm282_vm10  ;;  %v233_v41 = vmul.f32 %v214_v8, %v1431_v3 }
 0x2fe   :  { %222 = vrot.lane.b32.xlu2 %v220_v9, %s1373_s1  ;;  %v278_v18 = vsub.f32 1.0, %v277_v17 }
 0x300   :  { %v279_v19 = vmul.f32 %v1286_v16, %v278_v18 }
 0x302   :  { %v280_v20 = vadd.f32 %v1286_v16, %v279_v19  ;;  %v371_v19 = vunpack.c.h.bf16 %v1517_v10 }
 0x304   :  { %v284_v23 = vsel %vm283_vm12, %v1286_v16, %v280_v20 }
 0x305   :  { %v289_v26 = vsel %vm286_vm13, %v288_v24, %v284_v23 }
 0x306   :  { %v302_v46 = vsub.f32 1.0, %v289_v26  ;;  %v308_v49 = vmul.f32 %v289_v26, %v1487_v40 }
 0x350   :  { %v293_v25 = vpop.permute.xlu1 %292 }
 0x351   :  { %v295_v27 = vmul.f32 %v293_v25, %v289_v26 }
 0x353   :  { %297 = vrot.lane.b32.xlu0 %v295_v27, %s1373_s1 }
 0x358   :  { %v223_v28 = vpop.permute.xlu2 %222 }
 0x359   :  { %v225_v29 = vadd.f32 %v223_v28, %v193_v50 }
 0x35b   :  { %1287 = vtanh.f32 %v225_v29 }
 0x361   :  { %v1288_v34 = vpop.eup %1287 }
 0x362   :  { %229 = vrot.lane.b32.xlu1 %v1288_v34, %s1374_s9 }
 0x3c5   :  { %v298_v35 = vpop.permute.xlu0 %297 }
 0x3c6   :  { %v300_v36 = vadd.f32 %v298_v35, %v237_v11 }
 0x3c8   :  { %1289 = vtanh.f32 %v300_v36 }
 0x3ce   :  { %v1290_v37 = vpop.eup %1289 }
 0x3cf   :  { %304 = vrot.lane.b32.xlu2 %v1290_v37, %s1374_s9 }
 0x3d4   :  { %v230_v39 = vpop.permute.xlu1 %229 }
 0x3d5   :  { %v232_v42 = vmul.f32 %v230_v39, %v227_v38 }
 0x3d7   :  { %v1524_v44 = vadd.f32 %v233_v41, %v232_v42 }
 0x3d9   :  { %v251_v45 = vpack.c.bf16 %v1524_v44, %v1524_v44 }
 0x3db   :  { %253 = vrot.lane.b32.xlu0 %v251_v45, %s1374_s9 }
 0x429   :  { %v305_v48 = vpop.permute.xlu2 %304 }
 0x42a   :  { %v307_v50 = vmul.f32 %v305_v48, %v302_v46 }
 0x42c   :  { %v1530_v51 = vadd.f32 %v308_v49, %v307_v50 }
 0x42e   :  { %v310_v52 = vpack.c.bf16 %v1530_v51, %v1530_v51 }
 0x430   :  { %312 = vrot.lane.b32.xlu1 %v310_v52, %s1374_s9 }
 0x44d   :  { %v254_v3 = vpop.permute.xlu0 %253 }
 0x44e   :  { %1220 = vmatmul.msk.bf16.vlgmr.msrb.gmra.mxu0 %vm73_vm1, %v254_v3 }
 0x44f   :  { %646 = vmatpush.bf16.msrb.mxu0 %v1419_v0 }
 0x453   :  { %647 = vmatpush.bf16.msrb.mxu0 %v1426_v2 }
 0x4a2   :  { %v313_v53 = vpop.permute.xlu1 %312 }
 0x4a3   :  { %1222 = vmatmul.msk.bf16.vlgmr.msrb.gmra.mxu1 %vm73_vm1, %v313_v53  ;;  %1225 = vmatmul.msk.bf16.vlgmr.msrb.gmra.mxu2 %vm73_vm1, %v313_v53 }
 0x4a4   :  { %666 = vmatpush.bf16.msrb.mxu1 %v1453_v30  ;;  %725 = vmatpush.bf16.msrb.mxu2 %v1458_v31 }
 0x4a8   :  { %667 = vmatpush.bf16.msrb.mxu1 %v1464_v32  ;;  %726 = vmatpush.bf16.msrb.mxu2 %v1470_v33 }
 0x4cb   :  { %v267_v40 = vpop.f32.mrf.mxu0 }
 0x4cc   :  { %v268_v54 = vadd.f32 %v1501_v43, %v267_v40 }
 0x4ce   :  { %351 = vrot.lane.b32.xlu2 %v268_v54, %s1373_s1 }
 0x4d3   :  { %v269_v55 = vpop.f32.mrf.mxu0 }
 0x520   :  { %v326_v56 = vpop.f32.mrf.mxu1 }
 0x521   :  { %v327_v57 = vadd.f32 %v1508_v47, %v326_v56 }
 0x523   :  { %v330_v58 = vadd.f32 %v327_v57, %v268_v54 }
 0x525   :  { %v1223_v59 = vmul.f32 -1.442695, %v330_v58 }
 0x526   :  { %v381_v60 = vpop.f32.mrf.mxu2 }
 0x527   :  { %1291 = vpow2.f32 %v1223_v59  ;;  %v382_v61 = vadd.f32 %v1439_v5, %v381_v60 }
 0x528   :  { %v328_v62 = vpop.f32.mrf.mxu1  ;;  %v352_v16 = vpop.permute.xlu2 %351 }
 0x529   :  { %426 = vrot.lane.b32.xlu0 %v382_v61, %s1373_s1  ;;  %v405_v20 = vadd.f32 %v382_v61, %v371_v19 }
 0x52b   :  { %v1227_v21 = vmul.f32 -1.442695, %v405_v20 }
 0x52d   :  { %v1292_v63 = vpop.eup %1291 }
 0x52e   :  { %v334_v1 = vadd.f32 1.0, %v1292_v63  ;;  %v383_v4 = vpop.f32.mrf.mxu2 }
 0x530   :  { %1293 = vrcp.f32 %v334_v1  ;;  %v346_v9 = vand.u32 2147483648, %v334_v1  ;;  %v344_v12 = vand.u32 2147483647, %v334_v1  ;;  %vm340_vm15 = vweird.f32 %v334_v1 }
 0x531   :  { %1295 = vpow2.f32 %v1227_v21 }
 0x532   :  { %v347_v14 = vor.u32 1.1754944e-38, %v346_v9  ;;  %vm345_vm3 = vcmp.eq.f32.partialorder %v344_v12, 8.507059e+37 }
 0x536   :  { %v1294_v6 = vpop.eup %1293 }
 0x537   :  { %v336_v7 = vmul.f32 %v1294_v6, %v334_v1  ;;  %vm341_vm14 = vweird.f32 %v1294_v6  ;;  %v1296_v22 = vpop.eup %1295 }
 0x538   :  { %vm342_vm2 = vmor %vm340_vm15, %vm341_vm14  ;;  %v409_v23 = vadd.f32 1.0, %v1296_v22 }
 0x539   :  { %v337_v8 = vsub.f32 1.0, %v336_v7 }
 0x53a   :  { %1297 = vrcp.f32 %v409_v23  ;;  %v421_v29 = vand.u32 2147483648, %v409_v23  ;;  %vm415_vm5 = vweird.f32 %v409_v23  ;;  %v419_v34 = vand.u32 2147483647, %v409_v23 }
 0x53b   :  { %v338_v11 = vmul.f32 %v1294_v6, %v337_v8 }
 0x53c   :  { %v422_v36 = vor.u32 1.1754944e-38, %v421_v29  ;;  %vm420_vm7 = vcmp.eq.f32.partialorder %v419_v34, 8.507059e+37 }
 0x53d   :  { %v339_v13 = vadd.f32 %v1294_v6, %v338_v11 }
 0x53f   :  { %v343_v15 = vsel %vm342_vm2, %v1294_v6, %v339_v13 }
 0x540   :  { %v348_v17 = vsel %vm345_vm3, %v347_v14, %v343_v15  ;;  %v1298_v24 = vpop.eup %1297 }
 0x541   :  { %v354_v18 = vmul.f32 %v352_v16, %v348_v17  ;;  %v411_v25 = vmul.f32 %v1298_v24, %v409_v23  ;;  %vm416_vm4 = vweird.f32 %v1298_v24  ;;  %v361_v49 = vsub.f32 1.0, %v348_v17 }
 0x542   :  { %vm417_vm6 = vmor %vm415_vm5, %vm416_vm4  ;;  %v367_v52 = vmul.f32 %v348_v17, %v1524_v44 }
 0x543   :  { %356 = vrot.lane.b32.xlu1 %v354_v18, %s1373_s1  ;;  %v412_v26 = vsub.f32 1.0, %v411_v25 }
 0x545   :  { %v413_v27 = vmul.f32 %v1298_v24, %v412_v26  ;;  %v1584_v26 = vld [vmem:[%s1745_s0 + $0xc] sm:$0xff]  }
 0x547   :  { %v414_v28 = vadd.f32 %v1298_v24, %v413_v27  ;;  %v505_v27 = vunpack.c.l.bf16 %v1584_v26 }
 0x549   :  { %v418_v35 = vsel %vm417_vm6, %v1298_v24, %v414_v28 }
 0x54a   :  { %v423_v10 = vsel %vm420_vm7, %v422_v36, %v418_v35 }
 0x54b   :  { %v436_v54 = vsub.f32 1.0, %v423_v10  ;;  %v442_v56 = vmul.f32 %v423_v10, %v1530_v51 }
 0x59b   :  { %v427_v37 = vpop.permute.xlu0 %426 }
 0x59c   :  { %v429_v38 = vmul.f32 %v427_v37, %v423_v10 }
 0x59e   :  { %431 = vrot.lane.b32.xlu2 %v429_v38, %s1373_s1 }
 0x5b5   :  { %v357_v39 = vpop.permute.xlu1 %356 }
 0x5b6   :  { %v359_v41 = vadd.f32 %v357_v39, %v327_v57 }
 0x5b8   :  { %1299 = vtanh.f32 %v359_v41 }
 0x5be   :  { %v1300_v42 = vpop.eup %1299 }
 0x5bf   :  { %363 = vrot.lane.b32.xlu0 %v1300_v42, %s1374_s9 }
 0x5f8   :  { %v432_v45 = vpop.permute.xlu2 %431 }
 0x5f9   :  { %v434_v46 = vadd.f32 %v432_v45, %v371_v19 }
 0x5fb   :  { %1301 = vtanh.f32 %v434_v46 }
 0x601   :  { %v1302_v48 = vpop.eup %1301 }
 0x602   :  { %438 = vrot.lane.b32.xlu1 %v1302_v48, %s1374_s9 }
 0x631   :  { %v364_v50 = vpop.permute.xlu0 %363 }
 0x632   :  { %v366_v3 = vmul.f32 %v364_v50, %v361_v49 }
 0x634   :  { %v1555_v53 = vadd.f32 %v367_v52, %v366_v3 }
 0x636   :  { %v385_v40 = vpack.c.bf16 %v1555_v53, %v1555_v53 }
 0x638   :  { %387 = vrot.lane.b32.xlu2 %v385_v40, %s1374_s9 }
 0x674   :  { %v439_v55 = vpop.permute.xlu1 %438 }
 0x675   :  { %v441_v57 = vmul.f32 %v439_v55, %v436_v54 }
 0x677   :  { %v1561_v58 = vadd.f32 %v442_v56, %v441_v57 }
 0x679   :  { %v444_v59 = vpack.c.bf16 %v1561_v58, %v1561_v58 }
 0x67b   :  { %446 = vrot.lane.b32.xlu0 %v444_v59, %s1374_s9 }
 0x692   :  { %v388_v44 = vpop.permute.xlu2 %387 }
 0x693   :  { %1226 = vmatmul.msk.bf16.vlgmr.msrb.gmra.mxu3 %vm73_vm1, %v388_v44 }
 0x694   :  { %780 = vmatpush.bf16.msrb.mxu3 %v1419_v0 }
 0x698   :  { %781 = vmatpush.bf16.msrb.mxu3 %v1426_v2 }
 0x6ed   :  { %v447_v60 = vpop.permute.xlu0 %446 }
 0x6ee   :  { %1228 = vmatmul.msk.bf16.vlgmr.msra.gmra.mxu0 %vm73_vm1, %v447_v60  ;;  %1231 = vmatmul.msk.bf16.vlgmr.msra.gmra.mxu1 %vm73_vm1, %v447_v60 }
 0x6ef   :  { %800 = vmatpush.bf16.msra.mxu0 %v1453_v30  ;;  %859 = vmatpush.bf16.msra.mxu1 %v1458_v31 }
 0x6f3   :  { %801 = vmatpush.bf16.msra.mxu0 %v1464_v32  ;;  %860 = vmatpush.bf16.msra.mxu1 %v1470_v33 }
 0x716   :  { %v401_v51 = vpop.f32.mrf.mxu3 }
 0x717   :  { %v402_v61 = vadd.f32 %v1501_v43, %v401_v51 }
 0x719   :  { %485 = vrot.lane.b32.xlu1 %v402_v61, %s1373_s1 }
 0x71e   :  { %v403_v62 = vpop.f32.mrf.mxu3 }
 0x76b   :  { %v460_v63 = vpop.f32.mrf.mxu0  ;;  %v515_v1 = vpop.f32.mrf.mxu1 }
 0x76c   :  { %v461_v4 = vadd.f32 %v1508_v47, %v460_v63  ;;  %v516_v6 = vadd.f32 %v1439_v5, %v515_v1 }
 0x76e   :  { %v464_v7 = vadd.f32 %v461_v4, %v402_v61  ;;  %560 = vrot.lane.b32.xlu2 %v516_v6, %s1373_s1  ;;  %v539_v28 = vadd.f32 %v516_v6, %v505_v27 }
 0x770   :  { %v1229_v8 = vmul.f32 -1.442695, %v464_v7  ;;  %v1233_v29 = vmul.f32 -1.442695, %v539_v28 }
 0x772   :  { %1303 = vpow2.f32 %v1229_v8 }
 0x773   :  { %v462_v9 = vpop.f32.mrf.mxu0  ;;  %v517_v11 = vpop.f32.mrf.mxu1 }
 0x778   :  { %v1304_v12 = vpop.eup %1303 }
 0x779   :  { %v468_v13 = vadd.f32 1.0, %v1304_v12 }
 0x77b   :  { %1305 = vrcp.f32 %v468_v13  ;;  %v480_v17 = vand.u32 2147483648, %v468_v13  ;;  %v478_v19 = vand.u32 2147483647, %v468_v13  ;;  %vm474_vm9 = vweird.f32 %v468_v13 }
 0x77c   :  { %1307 = vpow2.f32 %v1233_v29 }
 0x77d   :  { %v481_v21 = vor.u32 1.1754944e-38, %v480_v17  ;;  %vm479_vm11 = vcmp.eq.f32.partialorder %v478_v19, 8.507059e+37 }
 0x781   :  { %v1306_v14 = vpop.eup %1305 }
 0x782   :  { %v470_v15 = vmul.f32 %v1306_v14, %v468_v13  ;;  %vm475_vm8 = vweird.f32 %v1306_v14  ;;  %v1308_v34 = vpop.eup %1307 }
 0x783   :  { %vm476_vm10 = vmor %vm474_vm9, %vm475_vm8  ;;  %v543_v35 = vadd.f32 1.0, %v1308_v34 }
 0x784   :  { %v471_v16 = vsub.f32 1.0, %v470_v15 }
 0x785   :  { %1309 = vrcp.f32 %v543_v35  ;;  %v555_v41 = vand.u32 2147483648, %v543_v35  ;;  %vm549_vm13 = vweird.f32 %v543_v35  ;;  %v553_v42 = vand.u32 2147483647, %v543_v35 }
 0x786   :  { %v472_v18 = vmul.f32 %v1306_v14, %v471_v16 }
 0x787   :  { %v556_v46 = vor.u32 1.1754944e-38, %v555_v41  ;;  %vm554_vm15 = vcmp.eq.f32.partialorder %v553_v42, 8.507059e+37 }
 0x788   :  { %v473_v20 = vadd.f32 %v1306_v14, %v472_v18 }
 0x78a   :  { %v477_v22 = vsel %vm476_vm10, %v1306_v14, %v473_v20 }
 0x78b   :  { %v486_v23 = vpop.permute.xlu1 %485  ;;  %v482_v24 = vsel %vm479_vm11, %v481_v21, %v477_v22  ;;  %v1310_v36 = vpop.eup %1309 }
 0x78c   :  { %v488_v25 = vmul.f32 %v486_v23, %v482_v24  ;;  %v545_v10 = vmul.f32 %v1310_v36, %v543_v35  ;;  %vm550_vm12 = vweird.f32 %v1310_v36  ;;  %v495_v57 = vsub.f32 1.0, %v482_v24 }
 0x78d   :  { %vm551_vm14 = vmor %vm549_vm13, %vm550_vm12  ;;  %v501_v44 = vmul.f32 %v482_v24, %v1555_v53 }
 0x78e   :  { %490 = vrot.lane.b32.xlu0 %v488_v25, %s1373_s1  ;;  %v546_v37 = vsub.f32 1.0, %v545_v10 }
 0x790   :  { %v547_v38 = vmul.f32 %v1310_v36, %v546_v37 }
 0x792   :  { %v548_v39 = vadd.f32 %v1310_v36, %v547_v38  ;;  %v639_v38 = vunpack.c.h.bf16 %v1584_v26 }
 0x794   :  { %v552_v45 = vsel %vm551_vm14, %v1310_v36, %v548_v39 }
 0x795   :  { %v557_v49 = vsel %vm554_vm15, %v556_v46, %v552_v45 }
 0x796   :  { %v570_v62 = vsub.f32 1.0, %v557_v49  ;;  %v576_v1 = vmul.f32 %v557_v49, %v1561_v58 }
 0x7c8   :  { %v561_v48 = vpop.permute.xlu2 %560 }
 0x7c9   :  { %v563_v50 = vmul.f32 %v561_v48, %v557_v49 }
 0x7cb   :  { %565 = vrot.lane.b32.xlu1 %v563_v50, %s1373_s1 }
 0x800   :  { %v491_v52 = vpop.permute.xlu0 %490 }
 0x801   :  { %v493_v3 = vadd.f32 %v491_v52, %v461_v4 }
 0x803   :  { %1311 = vtanh.f32 %v493_v3 }
 0x809   :  { %v1312_v40 = vpop.eup %1311 }
 0x80a   :  { %497 = vrot.lane.b32.xlu2 %v1312_v40, %s1374_s9 }
 0x83d   :  { %v566_v54 = vpop.permute.xlu1 %565 }
 0x83e   :  { %v568_v55 = vadd.f32 %v566_v54, %v505_v27 }
 0x840   :  { %1313 = vtanh.f32 %v568_v55 }
 0x846   :  { %v1314_v56 = vpop.eup %1313 }
 0x847   :  { %572 = vrot.lane.b32.xlu0 %v1314_v56, %s1374_s9 }
 0x864   :  { %v498_v59 = vpop.permute.xlu2 %497 }
 0x865   :  { %v500_v60 = vmul.f32 %v498_v59, %v495_v57 }
 0x867   :  { %v1591_v51 = vadd.f32 %v501_v44, %v500_v60 }
 0x869   :  { %v519_v61 = vpack.c.bf16 %v1591_v51, %v1591_v51 }
 0x86b   :  { %521 = vrot.lane.b32.xlu1 %v519_v61, %s1374_s9 }
 0x8b9   :  { %v573_v63 = vpop.permute.xlu0 %572 }
 0x8ba   :  { %v575_v4 = vmul.f32 %v573_v63, %v570_v62 }
 0x8bc   :  { %v1597_v6 = vadd.f32 %v576_v1, %v575_v4 }
 0x8be   :  { %v578_v7 = vpack.c.bf16 %v1597_v6, %v1597_v6 }
 0x8c0   :  { %580 = vrot.lane.b32.xlu2 %v578_v7, %s1374_s9 }
 0x8dd   :  { %v522_v53 = vpop.permute.xlu1 %521 }
 0x8de   :  { %1232 = vmatmul.msk.bf16.vlgmr.msra.gmra.mxu2 %vm73_vm1, %v522_v53 }
 0x8df   :  { %914 = vmatpush.bf16.msra.mxu2 %v1419_v0 }
 0x8e3   :  { %915 = vmatpush.bf16.msra.mxu2 %v1426_v2 }
 0x91a   :  { %v581_v8 = vpop.permute.xlu2 %580 }
 0x91b   :  { %1234 = vmatmul.msk.bf16.vlgmr.msra.gmra.mxu3 %vm73_vm1, %v581_v8  ;;  %1237 = vmatmul.msk.bf16.vlgmr.msrb.gmra.mxu0 %vm73_vm1, %v581_v8 }
 0x91c   :  { %934 = vmatpush.bf16.msra.mxu3 %v1453_v30  ;;  %993 = vmatpush.bf16.msrb.mxu0 %v1458_v31 }
 0x920   :  { %935 = vmatpush.bf16.msra.mxu3 %v1464_v32  ;;  %994 = vmatpush.bf16.msrb.mxu0 %v1470_v33 }
 0x961   :  { %v535_v58 = vpop.f32.mrf.mxu2 }
 0x962   :  { %v536_v9 = vadd.f32 %v1501_v43, %v535_v58 }
 0x964   :  { %619 = vrot.lane.b32.xlu0 %v536_v9, %s1373_s1 }
 0x969   :  { %v537_v11 = vpop.f32.mrf.mxu2 }
 0x998   :  { %v649_v12 = vpop.f32.mrf.mxu0 }
 0x999   :  { %v650_v13 = vadd.f32 %v1439_v5, %v649_v12 }
 0x99b   :  { %694 = vrot.lane.b32.xlu1 %v650_v13, %s1373_s1  ;;  %v673_v39 = vadd.f32 %v650_v13, %v639_v38 }
 0x99d   :  { %v1239_v41 = vmul.f32 -1.442695, %v673_v39 }
 0x99e   :  { %v594_v14 = vpop.f32.mrf.mxu3 }
 0x99f   :  { %v595_v16 = vadd.f32 %v1508_v47, %v594_v14 }
 0x9a0   :  { %v651_v15 = vpop.f32.mrf.mxu0 }
 0x9a1   :  { %v598_v17 = vadd.f32 %v595_v16, %v536_v9 }
 0x9a3   :  { %v1235_v19 = vmul.f32 -1.442695, %v598_v17 }
 0x9a5   :  { %1315 = vpow2.f32 %v1235_v19 }
 0x9a6   :  { %v596_v18 = vpop.f32.mrf.mxu3 }
 0x9ab   :  { %v1316_v20 = vpop.eup %1315 }
 0x9ac   :  { %v602_v21 = vadd.f32 1.0, %v1316_v20 }
 0x9ae   :  { %1317 = vrcp.f32 %v602_v21  ;;  %v614_v28 = vand.u32 2147483648, %v602_v21  ;;  %vm608_vm3 = vweird.f32 %v602_v21  ;;  %v612_v29 = vand.u32 2147483647, %v602_v21 }
 0x9af   :  { %1319 = vpow2.f32 %v1239_v41 }
 0x9b0   :  { %v615_v35 = vor.u32 1.1754944e-38, %v614_v28  ;;  %vm613_vm5 = vcmp.eq.f32.partialorder %v612_v29, 8.507059e+37 }
 0x9b4   :  { %v1318_v22 = vpop.eup %1317 }
 0x9b5   :  { %v604_v23 = vmul.f32 %v1318_v22, %v602_v21  ;;  %vm609_vm2 = vweird.f32 %v1318_v22  ;;  %v1320_v42 = vpop.eup %1319 }
 0x9b6   :  { %vm610_vm4 = vmor %vm608_vm3, %vm609_vm2  ;;  %v677_v45 = vadd.f32 1.0, %v1320_v42 }
 0x9b7   :  { %v605_v24 = vsub.f32 1.0, %v604_v23 }
 0x9b8   :  { %1321 = vrcp.f32 %v677_v45  ;;  %v689_v3 = vand.u32 2147483648, %v677_v45  ;;  %vm683_vm7 = vweird.f32 %v677_v45  ;;  %v687_v40 = vand.u32 2147483647, %v677_v45 }
 0x9b9   :  { %v606_v25 = vmul.f32 %v1318_v22, %v605_v24 }
 0x9ba   :  { %v690_v26 = vor.u32 1.1754944e-38, %v689_v3  ;;  %vm688_vm9 = vcmp.eq.f32.partialorder %v687_v40, 8.507059e+37 }
 0x9bb   :  { %v607_v27 = vadd.f32 %v1318_v22, %v606_v25 }
 0x9bd   :  { %v611_v34 = vsel %vm610_vm4, %v1318_v22, %v607_v27 }
 0x9be   :  { %v616_v36 = vsel %vm613_vm5, %v615_v35, %v611_v34  ;;  %v1322_v46 = vpop.eup %1321 }
 0x9bf   :  { %v679_v48 = vmul.f32 %v1322_v46, %v677_v45  ;;  %vm684_vm6 = vweird.f32 %v1322_v46  ;;  %v629_v1 = vsub.f32 1.0, %v616_v36  ;;  %v635_v7 = vmul.f32 %v616_v36, %v1591_v51 }
 0x9c0   :  { %vm685_vm8 = vmor %vm683_vm7, %vm684_vm6 }
 0x9c1   :  { %v680_v49 = vsub.f32 1.0, %v679_v48 }
 0x9c3   :  { %v681_v50 = vmul.f32 %v1322_v46, %v680_v49 }
 0x9c5   :  { %v682_v52 = vadd.f32 %v1322_v46, %v681_v50 }
 0x9c7   :  { %v686_v54 = vsel %vm685_vm8, %v1322_v46, %v682_v52 }
 0x9c8   :  { %v691_v56 = vsel %vm688_vm9, %v690_v26, %v686_v54 }
 0x9c9   :  { %v704_v9 = vsub.f32 1.0, %v691_v56  ;;  %v710_v12 = vmul.f32 %v691_v56, %v1597_v6 }
 0x9d6   :  { %v620_v10 = vpop.permute.xlu0 %619 }
 0x9d7   :  { %v622_v37 = vmul.f32 %v620_v10, %v616_v36 }
 0x9d9   :  { %624 = vrot.lane.b32.xlu2 %v622_v37, %s1373_s1 }
 0xa0d   :  { %v695_v55 = vpop.permute.xlu1 %694 }
 0xa0e   :  { %v697_v57 = vmul.f32 %v695_v55, %v691_v56 }
 0xa10   :  { %699 = vrot.lane.b32.xlu0 %v697_v57, %s1373_s1 }
 0xa33   :  { %v625_v59 = vpop.permute.xlu2 %624 }
 0xa34   :  { %v627_v44 = vadd.f32 %v625_v59, %v595_v16 }
 0xa36   :  { %1323 = vtanh.f32 %v627_v44 }
 0xa3c   :  { %v1324_v60 = vpop.eup %1323 }
 0xa3d   :  { %631 = vrot.lane.b32.xlu1 %v1324_v60, %s1374_s9 }
 0xa82   :  { %v700_v61 = vpop.permute.xlu0 %699 }
 0xa83   :  { %v702_v62 = vadd.f32 %v700_v61, %v639_v38  ;;  %v1651_v38 = vld [vmem:[%s1745_s0 + $0x14] sm:$0xff]  }
 0xa84   :  { %v773_v39 = vunpack.c.l.bf16 %v1651_v38 }
 0xa85   :  { %1325 = vtanh.f32 %v702_v62 }
 0xa8b   :  { %v1326_v63 = vpop.eup %1325 }
 0xa8c   :  { %706 = vrot.lane.b32.xlu2 %v1326_v63, %s1374_s9 }
 0xaaf   :  { %v632_v4 = vpop.permute.xlu1 %631 }
 0xab0   :  { %v634_v53 = vmul.f32 %v632_v4, %v629_v1 }
 0xab2   :  { %v1622_v8 = vadd.f32 %v635_v7, %v634_v53 }
 0xab4   :  { %v653_v58 = vpack.c.bf16 %v1622_v8, %v1622_v8 }
 0xab6   :  { %655 = vrot.lane.b32.xlu0 %v653_v58, %s1374_s9 }
 0xae6   :  { %v707_v11 = vpop.permute.xlu2 %706 }
 0xae7   :  { %v709_v13 = vmul.f32 %v707_v11, %v704_v9 }
 0xae9   :  { %v1628_v14 = vadd.f32 %v710_v12, %v709_v13 }
 0xaeb   :  { %v712_v15 = vpack.c.bf16 %v1628_v14, %v1628_v14 }
 0xaed   :  { %714 = vrot.lane.b32.xlu1 %v712_v15, %s1374_s9 }
 0xb28   :  { %v656_v51 = vpop.permute.xlu0 %655 }
 0xb29   :  { %1238 = vmatmul.msk.bf16.vlgmr.msrb.gmra.mxu1 %vm73_vm1, %v656_v51 }
 0xb2a   :  { %1048 = vmatpush.bf16.msrb.mxu1 %v1419_v0 }
 0xb2e   :  { %1049 = vmatpush.bf16.msrb.mxu1 %v1426_v2 }
 0xb5f   :  { %v715_v16 = vpop.permute.xlu1 %714 }
 0xb60   :  { %1240 = vmatmul.msk.bf16.vlgmr.msrb.gmra.mxu2 %vm73_vm1, %v715_v16  ;;  %1243 = vmatmul.msk.bf16.vlgmr.msrb.gmra.mxu3 %vm73_vm1, %v715_v16 }
 0xb61   :  { %1068 = vmatpush.bf16.msrb.mxu2 %v1453_v30  ;;  %1127 = vmatpush.bf16.msrb.mxu3 %v1458_v31 }
 0xb65   :  { %1069 = vmatpush.bf16.msrb.mxu2 %v1464_v32  ;;  %1128 = vmatpush.bf16.msrb.mxu3 %v1470_v33 }
 0xba6   :  { %v669_v6 = vpop.f32.mrf.mxu1 }
 0xba7   :  { %v670_v17 = vadd.f32 %v1501_v43, %v669_v6 }
 0xba9   :  { %753 = vrot.lane.b32.xlu2 %v670_v17, %s1373_s1 }
 0xbae   :  { %v671_v0 = vpop.f32.mrf.mxu1 }
 0xbe3   :  { %v728_v2 = vpop.f32.mrf.mxu2  ;;  %v783_v18 = vpop.f32.mrf.mxu3 }
 0xbe4   :  { %v729_v19 = vadd.f32 %v1508_v47, %v728_v2  ;;  %v784_v20 = vadd.f32 %v1439_v5, %v783_v18 }
 0xbe6   :  { %v732_v21 = vadd.f32 %v729_v19, %v670_v17  ;;  %828 = vrot.lane.b32.xlu0 %v784_v20, %s1373_s1  ;;  %v807_v41 = vadd.f32 %v784_v20, %v773_v39 }
 0xbe8   :  { %v1241_v30 = vmul.f32 -1.442695, %v732_v21  ;;  %v1245_v42 = vmul.f32 -1.442695, %v807_v41 }
 0xbea   :  { %1327 = vpow2.f32 %v1241_v30 }
 0xbeb   :  { %v730_v31 = vpop.f32.mrf.mxu2  ;;  %v785_v32 = vpop.f32.mrf.mxu3 }
 0xbec   :  { %v1678_v31 = vld [vmem:[%s1744_s4] ss:$0 sm:$0xff] }
 0xbf0   :  { %v1328_v33 = vpop.eup %1327 }
 0xbf1   :  { %v736_v22 = vadd.f32 1.0, %v1328_v33 }
 0xbf3   :  { %1329 = vrcp.f32 %v736_v22  ;;  %v748_v27 = vand.u32 2147483648, %v736_v22  ;;  %v746_v29 = vand.u32 2147483647, %v736_v22  ;;  %vm742_vm11 = vweird.f32 %v736_v22 }
 0xbf4   :  { %1331 = vpow2.f32 %v1245_v42 }
 0xbf5   :  { %v749_v5 = vor.u32 1.1754944e-38, %v748_v27  ;;  %vm747_vm13 = vcmp.eq.f32.partialorder %v746_v29, 8.507059e+37 }
 0xbf9   :  { %v1330_v23 = vpop.eup %1329 }
 0xbfa   :  { %v738_v24 = vmul.f32 %v1330_v23, %v736_v22  ;;  %vm743_vm10 = vweird.f32 %v1330_v23  ;;  %v1332_v45 = vpop.eup %1331 }
 0xbfb   :  { %vm744_vm12 = vmor %vm742_vm11, %vm743_vm10  ;;  %v811_v46 = vadd.f32 1.0, %v1332_v45 }
 0xbfc   :  { %v739_v25 = vsub.f32 1.0, %v738_v24 }
 0xbfd   :  { %1333 = vrcp.f32 %v811_v46  ;;  %v823_v40 = vand.u32 2147483648, %v811_v46  ;;  %vm817_vm15 = vweird.f32 %v811_v46  ;;  %v821_v54 = vand.u32 2147483647, %v811_v46 }
 0xbfe   :  { %v740_v28 = vmul.f32 %v1330_v23, %v739_v25 }
 0xbff   :  { %v824_v55 = vor.u32 1.1754944e-38, %v823_v40  ;;  %vm822_vm3 = vcmp.eq.f32.partialorder %v821_v54, 8.507059e+37 }
 0xc00   :  { %v741_v34 = vadd.f32 %v1330_v23, %v740_v28 }
 0xc02   :  { %v745_v35 = vsel %vm744_vm12, %v1330_v23, %v741_v34 }
 0xc03   :  { %v754_v36 = vpop.permute.xlu2 %753  ;;  %v750_v10 = vsel %vm747_vm13, %v749_v5, %v745_v35  ;;  %v1334_v48 = vpop.eup %1333 }
 0xc04   :  { %v756_v37 = vmul.f32 %v754_v36, %v750_v10  ;;  %v813_v49 = vmul.f32 %v1334_v48, %v811_v46  ;;  %vm818_vm14 = vweird.f32 %v1334_v48  ;;  %v763_v4 = vsub.f32 1.0, %v750_v10 }
 0xc05   :  { %vm819_vm2 = vmor %vm817_vm15, %vm818_vm14  ;;  %v769_v53 = vmul.f32 %v750_v10, %v1622_v8 }
 0xc06   :  { %758 = vrot.lane.b32.xlu1 %v756_v37, %s1373_s1  ;;  %v814_v50 = vsub.f32 1.0, %v813_v49 }
 0xc08   :  { %v815_v52 = vmul.f32 %v1334_v48, %v814_v50 }
 0xc0a   :  { %v816_v3 = vadd.f32 %v1334_v48, %v815_v52 }
 0xc0c   :  { %v820_v26 = vsel %vm819_vm2, %v1334_v48, %v816_v3 }
 0xc0d   :  { %v825_v56 = vsel %vm822_vm3, %v824_v55, %v820_v26 }
 0xc0e   :  { %v838_v12 = vsub.f32 1.0, %v825_v56  ;;  %v844_v15 = vmul.f32 %v825_v56, %v1628_v14 }
 0xc58   :  { %v829_v57 = vpop.permute.xlu0 %828 }
 0xc59   :  { %v831_v59 = vmul.f32 %v829_v57, %v825_v56 }
 0xc5b   :  { %833 = vrot.lane.b32.xlu2 %v831_v59, %s1373_s1 }
 0xc78   :  { %v759_v44 = vpop.permute.xlu1 %758 }
 0xc79   :  { %v761_v60 = vadd.f32 %v759_v44, %v729_v19 }
 0xc7b   :  { %1335 = vtanh.f32 %v761_v60 }
 0xc81   :  { %v1336_v61 = vpop.eup %1335 }
 0xc82   :  { %765 = vrot.lane.b32.xlu0 %v1336_v61, %s1374_s9 }
 0xcb5   :  { %v834_v62 = vpop.permute.xlu2 %833 }
 0xcb6   :  { %v836_v63 = vadd.f32 %v834_v62, %v773_v39  ;;  %v907_v39 = vunpack.c.h.bf16 %v1651_v38 }
 0xcb8   :  { %1337 = vtanh.f32 %v836_v63 }
 0xcbe   :  { %v1338_v1 = vpop.eup %1337 }
 0xcbf   :  { %840 = vrot.lane.b32.xlu1 %v1338_v1, %s1374_s9 }
 0xcf4   :  { %v766_v7 = vpop.permute.xlu0 %765 }
 0xcf5   :  { %v768_v58 = vmul.f32 %v766_v7, %v763_v4 }
 0xcf7   :  { %v1658_v9 = vadd.f32 %v769_v53, %v768_v58 }
 0xcf9   :  { %v787_v11 = vpack.c.bf16 %v1658_v9, %v1658_v9 }
 0xcfb   :  { %789 = vrot.lane.b32.xlu2 %v787_v11, %s1374_s9 }
 0xd31   :  { %v841_v13 = vpop.permute.xlu1 %840 }
 0xd32   :  { %v843_v51 = vmul.f32 %v841_v13, %v838_v12 }
 0xd34   :  { %v1664_v16 = vadd.f32 %v844_v15, %v843_v51 }
 0xd36   :  { %v846_v6 = vpack.c.bf16 %v1664_v16, %v1664_v16 }
 0xd38   :  { %848 = vrot.lane.b32.xlu0 %v846_v6, %s1374_s9 }
 0xd55   :  { %v790_v8 = vpop.permute.xlu2 %789 }
 0xd56   :  { %1244 = vmatmul.msk.bf16.vlgmr.msra.gmra.mxu0 %vm73_vm1, %v790_v8 }
 0xdaa   :  { %v849_v17 = vpop.permute.xlu0 %848 }
 0xdab   :  { %1246 = vmatmul.msk.bf16.vlgmr.msra.gmra.mxu1 %vm73_vm1, %v849_v17  ;;  %1249 = vmatmul.msk.bf16.vlgmr.msra.gmra.mxu2 %vm73_vm1, %v849_v17 }
 0xdd3   :  { %v803_v0 = vpop.f32.mrf.mxu0 }
 0xdd4   :  { %v804_v2 = vadd.f32 %v1501_v43, %v803_v0 }
 0xdd6   :  { %887 = vrot.lane.b32.xlu1 %v804_v2, %s1373_s1 }
 0xddb   :  { %v805_v14 = vpop.f32.mrf.mxu0 }
 0xe28   :  { %v862_v18 = vpop.f32.mrf.mxu1 }
 0xe29   :  { %v863_v19 = vadd.f32 %v1508_v47, %v862_v18 }
 0xe2b   :  { %v866_v20 = vadd.f32 %v863_v19, %v804_v2 }
 0xe2d   :  { %v1247_v21 = vmul.f32 -1.442695, %v866_v20 }
 0xe2e   :  { %v917_v30 = vpop.f32.mrf.mxu2 }
 0xe2f   :  { %1339 = vpow2.f32 %v1247_v21  ;;  %v918_v32 = vadd.f32 %v1678_v31, %v917_v30  ;;  %v1713_v21 = vld [vmem:[%s1749_s6] ss:$0 sm:$0xff] }
 0xe30   :  { %v864_v33 = vpop.f32.mrf.mxu1 }
 0xe31   :  { %962 = vrot.lane.b32.xlu2 %v918_v32, %s1373_s1  ;;  %v941_v41 = vadd.f32 %v918_v32, %v907_v39 }
 0xe33   :  { %v1251_v42 = vmul.f32 -1.442695, %v941_v41 }
 0xe35   :  { %v1340_v43 = vpop.eup %1339 }
 0xe36   :  { %v870_v22 = vadd.f32 1.0, %v1340_v43  ;;  %v919_v23 = vpop.f32.mrf.mxu2 }
 0xe38   :  { %1341 = vrcp.f32 %v870_v22  ;;  %v882_v27 = vand.u32 2147483648, %v870_v22  ;;  %v880_v29 = vand.u32 2147483647, %v870_v22  ;;  %vm876_vm5 = vweird.f32 %v870_v22 }
 0xe39   :  { %1343 = vpow2.f32 %v1251_v42 }
 0xe3a   :  { %v883_v5 = vor.u32 1.1754944e-38, %v882_v27  ;;  %vm881_vm7 = vcmp.eq.f32.partialorder %v880_v29, 8.507059e+37 }
 0xe3e   :  { %v1342_v24 = vpop.eup %1341 }
 0xe3f   :  { %v872_v47 = vmul.f32 %v1342_v24, %v870_v22  ;;  %vm877_vm4 = vweird.f32 %v1342_v24  ;;  %v1344_v45 = vpop.eup %1343 }
 0xe40   :  { %vm878_vm6 = vmor %vm876_vm5, %vm877_vm4  ;;  %v945_v46 = vadd.f32 1.0, %v1344_v45 }
 0xe41   :  { %v873_v25 = vsub.f32 1.0, %v872_v47 }
 0xe42   :  { %1345 = vrcp.f32 %v945_v46  ;;  %v957_v40 = vand.u32 2147483648, %v945_v46  ;;  %vm951_vm9 = vweird.f32 %v945_v46  ;;  %v955_v54 = vand.u32 2147483647, %v945_v46 }
 0xe43   :  { %v874_v28 = vmul.f32 %v1342_v24, %v873_v25 }
 0xe44   :  { %v958_v55 = vor.u32 1.1754944e-38, %v957_v40  ;;  %vm956_vm11 = vcmp.eq.f32.partialorder %v955_v54, 8.507059e+37 }
 0xe45   :  { %v875_v34 = vadd.f32 %v1342_v24, %v874_v28 }
 0xe47   :  { %v879_v35 = vsel %vm878_vm6, %v1342_v24, %v875_v34 }
 0xe48   :  { %v888_v36 = vpop.permute.xlu1 %887  ;;  %v884_v10 = vsel %vm881_vm7, %v883_v5, %v879_v35  ;;  %v1346_v48 = vpop.eup %1345 }
 0xe49   :  { %v890_v37 = vmul.f32 %v888_v36, %v884_v10  ;;  %v947_v49 = vmul.f32 %v1346_v48, %v945_v46  ;;  %vm952_vm8 = vweird.f32 %v1346_v48  ;;  %v897_v1 = vsub.f32 1.0, %v884_v10 }
 0xe4a   :  { %vm953_vm10 = vmor %vm951_vm9, %vm952_vm8  ;;  %v903_v7 = vmul.f32 %v884_v10, %v1658_v9 }
 0xe4b   :  { %892 = vrot.lane.b32.xlu0 %v890_v37, %s1373_s1  ;;  %v948_v50 = vsub.f32 1.0, %v947_v49 }
 0xe4d   :  { %v949_v52 = vmul.f32 %v1346_v48, %v948_v50 }
 0xe4f   :  { %v950_v3 = vadd.f32 %v1346_v48, %v949_v52 }
 0xe51   :  { %v954_v26 = vsel %vm953_vm10, %v1346_v48, %v950_v3 }
 0xe52   :  { %v959_v56 = vsel %vm956_vm11, %v958_v55, %v954_v26 }
 0xe53   :  { %v972_v12 = vsub.f32 1.0, %v959_v56  ;;  %v978_v15 = vmul.f32 %v959_v56, %v1664_v16  ;;  %v1705_v16 = vld [vmem:[%s1746_s5] ss:$0 sm:$0xff] }
 0xe8b   :  { %v963_v38 = vpop.permute.xlu2 %962 }
 0xe8c   :  { %v965_v57 = vmul.f32 %v963_v38, %v959_v56 }
 0xe8e   :  { %967 = vrot.lane.b32.xlu1 %v965_v57, %s1373_s1 }
 0xebd   :  { %v893_v59 = vpop.permute.xlu0 %892 }
 0xebe   :  { %v895_v44 = vadd.f32 %v893_v59, %v863_v19 }
 0xec0   :  { %1347 = vtanh.f32 %v895_v44 }
 0xec6   :  { %v1348_v60 = vpop.eup %1347 }
 0xec7   :  { %899 = vrot.lane.b32.xlu2 %v1348_v60, %s1374_s9 }
 0xf00   :  { %v968_v61 = vpop.permute.xlu1 %967 }
 0xf01   :  { %v970_v62 = vadd.f32 %v968_v61, %v907_v39  ;;  %v1254_v39 = vld [vmem:[%s1745_s0 + $0x1c] sm:$0xf] }
 0xf02   :  { %v1041_v41 = vunpack.c.l.bf16 %v1254_v39 }
 0xf03   :  { %1349 = vtanh.f32 %v970_v62 }
 0xf09   :  { %v1350_v63 = vpop.eup %1349 }
 0xf0a   :  { %974 = vrot.lane.b32.xlu0 %v1350_v63, %s1374_s9 }
 0xf21   :  { %v900_v4 = vpop.permute.xlu2 %899 }
 0xf22   :  { %v902_v53 = vmul.f32 %v900_v4, %v897_v1 }
 0xf24   :  { %v1688_v58 = vadd.f32 %v903_v7, %v902_v53 }
 0xf26   :  { %v921_v11 = vpack.c.bf16 %v1688_v58, %v1688_v58 }
 0xf28   :  { %923 = vrot.lane.b32.xlu1 %v921_v11, %s1374_s9 }
 0xf7c   :  { %v975_v13 = vpop.permute.xlu0 %974 }
 0xf7d   :  { %v977_v51 = vmul.f32 %v975_v13, %v972_v12 }
 0xf7f   :  { %v1694_v6 = vadd.f32 %v978_v15, %v977_v51 }
 0xf81   :  { %v980_v8 = vpack.c.bf16 %v1694_v6, %v1694_v6 }
 0xf83   :  { %982 = vrot.lane.b32.xlu2 %v980_v8, %s1374_s9 }
 0xf9a   :  { %v924_v9 = vpop.permute.xlu1 %923 }
 0xf9b   :  { %1250 = vmatmul.msk.bf16.vlgmr.msra.gmra.mxu3 %vm73_vm1, %v924_v9 }
 0xfdd   :  { %v983_v17 = vpop.permute.xlu2 %982 }
 0xfde   :  { %1252 = vmatmul.msk.bf16.vlgmr.msrb.gmra.mxu0 %vm73_vm1, %v983_v17  ;;  %1255 = vmatmul.msk.bf16.vlgmr.msrb.gmra.mxu1 %vm73_vm1, %v983_v17 }
0x101e   :  { %v937_v0 = vpop.f32.mrf.mxu3 }
0x101f   :  { %v938_v2 = vadd.f32 %v1705_v16, %v937_v0 }
0x1021   :  { %1021 = vrot.lane.b32.xlu0 %v938_v2, %s1373_s1 }
0x1026   :  { %v939_v14 = vpop.f32.mrf.mxu3 }
0x105b   :  { %v996_v18 = vpop.f32.mrf.mxu0  ;;  %v1051_v19 = vpop.f32.mrf.mxu1 }
0x105c   :  { %v1052_v20 = vadd.f32 %v1678_v31, %v1051_v19  ;;  %v997_v30 = vadd.f32 %v1713_v21, %v996_v18 }
0x105e   :  { %1096 = vrot.lane.b32.xlu1 %v1052_v20, %s1373_s1  ;;  %v1000_v32 = vadd.f32 %v997_v30, %v938_v2  ;;  %v1075_v42 = vadd.f32 %v1052_v20, %v1041_v41 }
0x1060   :  { %v1253_v22 = vmul.f32 -1.442695, %v1000_v32  ;;  %v1257_v45 = vmul.f32 -1.442695, %v1075_v42 }
0x1062   :  { %1351 = vpow2.f32 %v1253_v22 }
0x1063   :  { %v998_v33 = vpop.f32.mrf.mxu0  ;;  %v1053_v43 = vpop.f32.mrf.mxu1 }
0x1068   :  { %v1352_v23 = vpop.eup %1351 }
0x1069   :  { %v1004_v24 = vadd.f32 1.0, %v1352_v23 }
0x106b   :  { %1353 = vrcp.f32 %v1004_v24  ;;  %v1016_v29 = vand.u32 2147483648, %v1004_v24  ;;  %vm1010_vm13 = vweird.f32 %v1004_v24  ;;  %v1014_v34 = vand.u32 2147483647, %v1004_v24 }
0x106c   :  { %1355 = vpow2.f32 %v1257_v45 }
0x106d   :  { %v1017_v35 = vor.u32 1.1754944e-38, %v1016_v29  ;;  %vm1015_vm15 = vcmp.eq.f32.partialorder %v1014_v34, 8.507059e+37 }
0x1071   :  { %v1354_v47 = vpop.eup %1353 }
0x1072   :  { %v1006_v25 = vmul.f32 %v1354_v47, %v1004_v24  ;;  %vm1011_vm12 = vweird.f32 %v1354_v47  ;;  %v1356_v46 = vpop.eup %1355 }
0x1073   :  { %vm1012_vm14 = vmor %vm1010_vm13, %vm1011_vm12  ;;  %v1079_v48 = vadd.f32 1.0, %v1356_v46 }
0x1074   :  { %v1007_v31 = vsub.f32 1.0, %v1006_v25 }
0x1075   :  { %1357 = vrcp.f32 %v1079_v48  ;;  %v1091_v54 = vand.u32 2147483648, %v1079_v48  ;;  %vm1085_vm3 = vweird.f32 %v1079_v48  ;;  %v1089_v26 = vand.u32 2147483647, %v1079_v48 }
0x1076   :  { %v1008_v27 = vmul.f32 %v1354_v47, %v1007_v31 }
0x1077   :  { %v1092_v38 = vor.u32 1.1754944e-38, %v1091_v54  ;;  %vm1090_vm5 = vcmp.eq.f32.partialorder %v1089_v26, 8.507059e+37 }
0x1078   :  { %v1009_v28 = vadd.f32 %v1354_v47, %v1008_v27 }
0x107a   :  { %v1013_v5 = vsel %vm1012_vm14, %v1354_v47, %v1009_v28 }
0x107b   :  { %v1018_v36 = vsel %vm1015_vm15, %v1017_v35, %v1013_v5  ;;  %v1358_v49 = vpop.eup %1357 }
0x107c   :  { %v1081_v50 = vmul.f32 %v1358_v49, %v1079_v48  ;;  %vm1086_vm2 = vweird.f32 %v1358_v49  ;;  %v1031_v4 = vsub.f32 1.0, %v1018_v36  ;;  %v1037_v53 = vmul.f32 %v1018_v36, %v1688_v58 }
0x107d   :  { %vm1087_vm4 = vmor %vm1085_vm3, %vm1086_vm2 }
0x107e   :  { %v1082_v52 = vsub.f32 1.0, %v1081_v50 }
0x1080   :  { %v1083_v3 = vmul.f32 %v1358_v49, %v1082_v52 }
0x1082   :  { %v1084_v40 = vadd.f32 %v1358_v49, %v1083_v3 }
0x1084   :  { %v1088_v55 = vsel %vm1087_vm4, %v1358_v49, %v1084_v40 }
0x1085   :  { %v1093_v57 = vsel %vm1090_vm5, %v1092_v38, %v1088_v55 }
0x1086   :  { %v1106_v15 = vsub.f32 1.0, %v1093_v57  ;;  %v1112_v8 = vmul.f32 %v1093_v57, %v1694_v6 }
0x1093   :  { %v1022_v10 = vpop.permute.xlu0 %1021 }
0x1094   :  { %v1024_v37 = vmul.f32 %v1022_v10, %v1018_v36 }
0x1096   :  { %1026 = vrot.lane.b32.xlu2 %v1024_v37, %s1373_s1 }
0x10d0   :  { %v1097_v56 = vpop.permute.xlu1 %1096 }
0x10d1   :  { %v1099_v59 = vmul.f32 %v1097_v56, %v1093_v57 }
0x10d3   :  { %1101 = vrot.lane.b32.xlu0 %v1099_v59, %s1373_s1 }
0x10f0   :  { %v1027_v44 = vpop.permute.xlu2 %1026 }
0x10f1   :  { %v1029_v60 = vadd.f32 %v1027_v44, %v997_v30 }
0x10f3   :  { %1359 = vtanh.f32 %v1029_v60 }
0x10f9   :  { %v1360_v61 = vpop.eup %1359 }
0x10fa   :  { %1033 = vrot.lane.b32.xlu1 %v1360_v61, %s1374_s9 }
0x1145   :  { %v1102_v62 = vpop.permute.xlu0 %1101 }
0x1146   :  { %v1104_v63 = vadd.f32 %v1102_v62, %v1041_v41 }
0x1148   :  { %1361 = vtanh.f32 %v1104_v63 }
0x114e   :  { %v1362_v1 = vpop.eup %1361 }
0x114f   :  { %1108 = vrot.lane.b32.xlu2 %v1362_v1, %s1374_s9 }
0x116c   :  { %v1034_v7 = vpop.permute.xlu1 %1033 }
0x116d   :  { %v1036_v11 = vmul.f32 %v1034_v7, %v1031_v4 }
0x116f   :  { %v1038_v12 = vadd.f32 %v1037_v53, %v1036_v11 }
0x1171   :  { %v1055_v13 = vpack.c.bf16 %v1038_v12, %v1038_v12 }
0x1173   :  { %1057 = vrot.lane.b32.xlu0 %v1055_v13, %s1374_s9 }
0x11a9   :  { %v1109_v51 = vpop.permute.xlu2 %1108 }
0x11aa   :  { %v1111_v9 = vmul.f32 %v1109_v51, %v1106_v15 }
0x11ac   :  { %v1113_v17 = vadd.f32 %v1112_v8, %v1111_v9 }
0x11ae   :  { %v1114_v0 = vpack.c.bf16 %v1113_v17, %v1113_v17 }
0x11b0   :  { %1116 = vrot.lane.b32.xlu1 %v1114_v0, %s1374_s9 }
0x11e5   :  { %v1058_v2 = vpop.permute.xlu0 %1057 }
0x11e6   :  { %1256 = vmatmul.msk.bf16.vlgmr.msrb.gmra.mxu2 %vm73_vm1, %v1058_v2 }
0x1222   :  { %v1117_v14 = vpop.permute.xlu1 %1116 }
0x1223   :  { %1258 = vmatmul.msk.bf16.vlgmr.msrb.gmra.mxu3 %vm73_vm1, %v1117_v14 }
0x1269   :  { %v1071_v58 = vpop.f32.mrf.mxu2 }
0x126a   :  { %v1072_v18 = vadd.f32 %v1705_v16, %v1071_v58 }
0x126c   :  { %1155 = vrot.lane.b32.xlu2 %v1072_v18, %s1373_s1 }
0x1271   :  { %v1073_v19 = vpop.f32.mrf.mxu2 }
0x1274   :  { %1174 = vrot.lane.b32.xlu2 %v1113_v17, %s1374_s9 }
0x12a6   :  { %v1130_v6 = vpop.f32.mrf.mxu3 }
0x12a7   :  { %v1131_v20 = vadd.f32 %v1713_v21, %v1130_v6 }
0x12a9   :  { %v1134_v30 = vadd.f32 %v1131_v20, %v1072_v18 }
0x12ab   :  { %v1259_v32 = vmul.f32 -1.442695, %v1134_v30 }
0x12ad   :  { %1363 = vpow2.f32 %v1259_v32 }
0x12ae   :  { %v1132_v33 = vpop.f32.mrf.mxu3 }
0x12b3   :  { %v1364_v43 = vpop.eup %1363 }
0x12b4   :  { %v1138_v22 = vadd.f32 1.0, %v1364_v43 }
0x12b6   :  { %1365 = vrcp.f32 %v1138_v22  ;;  %v1150_v25 = vand.u32 2147483648, %v1138_v22  ;;  %v1148_v31 = vand.u32 2147483647, %v1138_v22  ;;  %vm1144_vm7 = vweird.f32 %v1138_v22 }
0x12b8   :  { %v1151_v28 = vor.u32 1.1754944e-38, %v1150_v25  ;;  %vm1149_vm9 = vcmp.eq.f32.partialorder %v1148_v31, 8.507059e+37 }
0x12bc   :  { %v1366_v23 = vpop.eup %1365 }
0x12bd   :  { %v1140_v24 = vmul.f32 %v1366_v23, %v1138_v22  ;;  %vm1145_vm6 = vweird.f32 %v1366_v23 }
0x12be   :  { %vm1146_vm8 = vmor %vm1144_vm7, %vm1145_vm6 }
0x12bf   :  { %v1141_v47 = vsub.f32 1.0, %v1140_v24 }
0x12c1   :  { %v1142_v16 = vmul.f32 %v1366_v23, %v1141_v47 }
0x12c3   :  { %v1143_v27 = vadd.f32 %v1366_v23, %v1142_v16 }
0x12c5   :  { %v1147_v29 = vsel %vm1146_vm8, %v1366_v23, %v1143_v27 }
0x12c6   :  { %v1156_v21 = vpop.permute.xlu2 %1155  ;;  %v1152_v34 = vsel %vm1149_vm9, %v1151_v28, %v1147_v29 }
0x12c7   :  { %v1158_v5 = vmul.f32 %v1156_v21, %v1152_v34  ;;  %v1165_v37 = vsub.f32 1.0, %v1152_v34  ;;  %v1171_v41 = vmul.f32 %v1152_v34, %v1038_v12 }
0x12c9   :  { %1160 = vrot.lane.b32.xlu0 %v1158_v5, %s1373_s1 }
0x12ce   :  { %v1175_v46 = vpop.permute.xlu2 %1174 }
0x133b   :  { %v1161_v35 = vpop.permute.xlu0 %1160 }
0x133c   :  { %v1163_v36 = vadd.f32 %v1161_v35, %v1131_v20 }
0x133e   :  { %1367 = vtanh.f32 %v1163_v36 }
0x1344   :  { %v1368_v10 = vpop.eup %1367 }
0x1345   :  { %1167 = vrot.lane.b32.xlu1 %v1368_v10, %s1374_s9 }
0x13b7   :  { %v1168_v39 = vpop.permute.xlu1 %1167 }
0x13b8   :  { %v1170_v42 = vmul.f32 %v1168_v39, %v1165_v37 }
0x13ba   :  { %v1172_v45 = vadd.f32 %v1171_v41, %v1170_v42 }
0x13bc   :  { %v1177_v48 = vsel %vm73_vm1, %v1175_v46, %v1172_v45  ;;  %1181 = vrot.lane.b32.xlu0 %v1172_v45, %s1374_s9 }
0x13bd   :  { %1179 = vst.msk [vmem:[#allocation2] sm:$0xff] %vm31_vm0, %v1177_v48 }
0x142e   :  { %v1182_v49 = vpop.permute.xlu0 %1181 }
0x142f   :  { %1184 = vst.msk [vmem:[%s1750_s7] sm:$0xff] %vm73_vm1, %v1182_v49 }

</bundles_post_ra>
